<compile_context>
chip_gen: v7x
topology: tpu7x:2x2x1
jax: 0.10.0
libtpu: 0.0.40
codegen_flags: <defaults>
</compile_context>

<pallas_src>
import functools
import math

import jax
import jax.numpy as jnp
import numpy as np
from jax.experimental import pallas as pl
from jax.experimental.pallas import tpu as pltpu

# ----------------------------- small test config ----------------------------
BATCH = 2
SEQ_DEC = 8          # decoder sequence length
SEQ_ENC = 16         # encoder sequence length
HIDDEN = 32
NUM_HEADS = 4
INTERMEDIATE = 64
LN_EPS = 1e-12
NEG_INF = -1e9

# row indices inside the packed bias/gamma/beta slab
_V_SA_BQKV, _V_SA_BO, _V_SA_G, _V_SA_B = 0, 1, 2, 3
_V_CA_BQ, _V_CA_BKV, _V_CA_BO, _V_CA_G, _V_CA_B = 4, 5, 6, 7, 8
_V_FF_BI, _V_FF_BO, _V_FF_G, _V_FF_B = 9, 10, 11, 12
_NUM_VEC_ROWS = 13


# --------------------------------- kernel -----------------------------------
def _decoder_layer_kernel(
    h_ref,        # (B*S, H)  f32   decoder hidden states (batch folded into rows)
    enc_ref,      # (B*T, H)  f32   encoder hidden states (batch folded into rows)
    kvalid_ref,   # (B, T)    f32   1.0 = valid encoder key, 0.0 = padding
    sa_wqkv_ref,  # (H, 3H)   bf16  fused self-attention Q|K|V weight
    ca_wkv_ref,   # (H, 2H)   bf16  fused cross-attention K|V weight
    w_hh_ref,     # (3, H, H) bf16  [sa_out_proj, ca_query, ca_out_proj]
    ff_wi_ref,    # (H, I)    bf16  intermediate dense
    ff_wo_ref,    # (I, H)    bf16  output dense
    vec_ref,      # (13, Wv)  f32   packed biases / LN gammas / LN betas
    out_ref,      # (B*S, H)  f32
    ctx_ref,      # (B*S, H)  f32   VMEM scratch: per-head context outputs
    *, B, S, T, H, I, NH,
):
    D = H // NH
    scale = 1.0 / math.sqrt(D)

    def vrow(i, w):                       # static (1, w) slice of the vector slab
        return vec_ref[i:i + 1, 0:w]

    def dot_nn(a, b):
        # (m, k) @ (k, n): bf16 MXU operands, f32 accumulation.
        return jax.lax.dot_general(
            a.astype(jnp.bfloat16), b.astype(jnp.bfloat16),
            dimension_numbers=(((1,), (0,)), ((), ())),
            preferred_element_type=jnp.float32)

    def dot_nt(a, b):
        # contract the LAST dim of both operands ((m,k),(n,k) -> (m,n));
        # avoids an explicit XLU transpose of K.
        return jax.lax.dot_general(
            a.astype(jnp.bfloat16), b.astype(jnp.bfloat16),
            dimension_numbers=(((1,), (1,)), ((), ())),
            preferred_element_type=jnp.float32)

    def layer_norm(x, g, b):
        mu = jnp.mean(x, axis=-1, keepdims=True)
        xc = x - mu
        var = jnp.mean(xc * xc, axis=-1, keepdims=True)
        return xc * jax.lax.rsqrt(var + LN_EPS) * g + b

    def softmax(s):
        m = jnp.max(s, axis=-1, keepdims=True)
        e = jnp.exp(s - m)
        return e * pl.reciprocal(jnp.sum(e, axis=-1, keepdims=True), approx=True)

    def gelu(x):
        # tanh-approx GELU (EUP tanh).
        # TODO(synk): switch to exact erf GELU if the target config uses "gelu" (erf).
        return 0.5 * x * (1.0 + jnp.tanh(0.7978845608028654 * (x + 0.044715 * x * x * x)))

    h = h_ref[...]        # (B*S, H) f32
    enc = enc_ref[...]    # (B*T, H) f32

    # causal additive self-attention mask, generated in-kernel (no mask DMA).
    qi = jax.lax.broadcasted_iota(jnp.int32, (S, S), 0)
    ki = jax.lax.broadcasted_iota(jnp.int32, (S, S), 1)
    causal = jnp.where(qi >= ki, 0.0, NEG_INF)                     # (S, S)

    # --------------------- 1) self-attention block ---------------------------
    qkv = dot_nn(h, sa_wqkv_ref[...]) + vrow(_V_SA_BQKV, 3 * H)    # (B*S, 3H)
    q = qkv[:, 0:H] * scale        # q pre-scaled once, not per score tile
    k = qkv[:, H:2 * H]
    v = qkv[:, 2 * H:3 * H]
    for b in range(B):             # static loops: per-batch masked softmax only
        rq = slice(b * S, (b + 1) * S)
        for hd in range(NH):
            c = slice(hd * D, (hd + 1) * D)
            s = dot_nt(q[rq, c], k[rq, c]) + causal                # (S, S)
            ctx_ref[rq, c] = dot_nn(softmax(s), v[rq, c])          # (S, D)
    sa_dense = dot_nn(ctx_ref[...], w_hh_ref[0]) + vrow(_V_SA_BO, H)
    sa_out = layer_norm(sa_dense + h, vrow(_V_SA_G, H), vrow(_V_SA_B, H))

    # --------------------- 2) cross-attention block --------------------------
    q2 = (dot_nn(sa_out, w_hh_ref[1]) + vrow(_V_CA_BQ, H)) * scale  # (B*S, H)
    kv2 = dot_nn(enc, ca_wkv_ref[...]) + vrow(_V_CA_BKV, 2 * H)     # (B*T, 2H)
    k2 = kv2[:, 0:H]
    v2 = kv2[:, H:2 * H]
    for b in range(B):
        rq = slice(b * S, (b + 1) * S)
        rk = slice(b * T, (b + 1) * T)
        # additive padding mask from the (1, T) key-valid row, built in-kernel,
        # hoisted out of the head loop.
        cmask = jnp.where(kvalid_ref[b:b + 1, :] > 0.5, 0.0, NEG_INF)   # (1, T)
        for hd in range(NH):
            c = slice(hd * D, (hd + 1) * D)
            s = dot_nt(q2[rq, c], k2[rk, c]) + cmask               # (S, T)
            ctx_ref[rq, c] = dot_nn(softmax(s), v2[rk, c])         # (S, D)
    ca_dense = dot_nn(ctx_ref[...], w_hh_ref[2]) + vrow(_V_CA_BO, H)
    ca_out = layer_norm(ca_dense + sa_out, vrow(_V_CA_G, H), vrow(_V_CA_B, H))

    # --------------------- 3) intermediate + 4) output -----------------------
    inter = gelu(dot_nn(ca_out, ff_wi_ref[...]) + vrow(_V_FF_BI, I))
    ffn = dot_nn(inter, ff_wo_ref[...]) + vrow(_V_FF_BO, H)
    out_ref[...] = layer_norm(ffn + ca_out, vrow(_V_FF_G, H), vrow(_V_FF_B, H))


# --------------------------- parameter packing -------------------------------
def _pack_params(params):
    """Pack the natural (HF-style) parameter dict into 6 kernel buffers."""
    H = params["sa_wq"].shape[0]
    I = params["ff_wi"].shape[1]
    bf16 = jnp.bfloat16

    sa_wqkv = jnp.concatenate([params["sa_wq"], params["sa_wk"], params["sa_wv"]],
                              axis=1).astype(bf16)                       # (H, 3H)
    ca_wkv = jnp.concatenate([params["ca_wk"], params["ca_wv"]],
                             axis=1).astype(bf16)                        # (H, 2H)
    w_hh = jnp.stack([params["sa_wo"], params["ca_wq"], params["ca_wo"]],
                     axis=0).astype(bf16)                                # (3, H, H)
    ff_wi = params["ff_wi"].astype(bf16)                                 # (H, I)
    ff_wo = params["ff_wo"].astype(bf16)                                 # (I, H)

    width = max(3 * H, 2 * H, I)
    rows = [
        jnp.concatenate([params["sa_bq"], params["sa_bk"], params["sa_bv"]]),
        params["sa_bo"], params["sa_ln_g"], params["sa_ln_b"],
        params["ca_bq"],
        jnp.concatenate([params["ca_bk"], params["ca_bv"]]),
        params["ca_bo"], params["ca_ln_g"], params["ca_ln_b"],
        params["ff_bi"], params["ff_bo"], params["ff_ln_g"], params["ff_ln_b"],
    ]
    assert len(rows) == _NUM_VEC_ROWS
    vec = jnp.stack([jnp.pad(r.astype(jnp.float32), (0, width - r.shape[0]))
                     for r in rows], axis=0)                             # (13, width)
    return sa_wqkv, ca_wkv, w_hh, ff_wi, ff_wo, vec


# --------------------------------- wrapper ----------------------------------
def transformer_decoder_layer(hidden_states, encoder_hidden_states, encoder_valid,
                              params, *, num_heads=NUM_HEADS):
    """Fused decoder layer.

    Self-attention uses a causal mask (built in-kernel); cross-attention masks
    padded encoder keys given by `encoder_valid` (B, T) with 1.0 = valid.
    Weights use (in_features, out_features) layout (transpose of torch.nn.Linear).
    """
    B, S, H = hidden_states.shape
    T = encoder_hidden_states.shape[1]
    I = params["ff_wi"].shape[1]

    h2d = hidden_states.reshape(B * S, H).astype(jnp.float32)
    enc2d = encoder_hidden_states.reshape(B * T, H).astype(jnp.float32)
    kvalid = encoder_valid.astype(jnp.float32)
    packed = _pack_params(params)

    vmem_spec = pl.BlockSpec(memory_space=pltpu.MemorySpace.VMEM)
    kernel = functools.partial(_decoder_layer_kernel,
                               B=B, S=S, T=T, H=H, I=I, NH=num_heads)

    # Single invocation (no grid): the whole problem is < 100 KiB so there is
    # nothing to pipeline, and every extra grid step would only add ~0.35 us of
    # overhead plus 9 BlockSpec re-evaluations.
    # TODO(synk): on v7x (2 TensorCores) reintroduce a leading size-2 "parallel"
    # grid axis splitting B*S rows once the layer is scaled to realistic sizes.
    out2d = pl.pallas_call(
        kernel,
        out_shape=jax.ShapeDtypeStruct((B * S, H), jnp.float32),
        in_specs=[vmem_spec] * (3 + len(packed)),
        out_specs=vmem_spec,
        scratch_shapes=[pltpu.VMEM((B * S, H), jnp.float32)],
        compiler_params=pltpu.CompilerParams(vmem_limit_bytes=32 * 1024 * 1024),
    )(h2d, enc2d, kvalid, *packed)

    # NOTE(out layout): the kernel keeps the folded (B*S, H) slab.  At H=32 an
    # in-kernel relayout to a lane-dense (B, S*H) store would cost more than the
    # masked stores it saves; with realistic H (>=128) this output is already
    # lane-dense.  The unfold below is wrapper-side layout plumbing only.
    return out2d.reshape(B, S, H)


# --------------------- independent pure-JAX (f32) reference ------------------
def _reference(hidden_states, encoder_hidden_states, encoder_valid, params,
               num_heads=NUM_HEADS):
    B, S, H = hidden_states.shape
    T = encoder_hidden_states.shape[1]
    D = H // num_heads
    p = params

    def split_heads(x):
        return x.reshape(B, -1, num_heads, D).transpose(0, 2, 1, 3)

    def merge_heads(x):
        return x.transpose(0, 2, 1, 3).reshape(B, -1, H)

    def mha(xq, xkv, wq, bq, wk, bk, wv, bv, mask):
        q = split_heads(xq @ wq + bq)
        k = split_heads(xkv @ wk + bk)
        v = split_heads(xkv @ wv + bv)
        s = jnp.einsum("bhqd,bhkd->bhqk", q, k) / np.sqrt(D) + mask[:, None, :, :]
        prob = jax.nn.softmax(s, axis=-1)
        return merge_heads(jnp.einsum("bhqk,bhkd->bhqd", prob, v))

    def ln(x, g, b):
        mu = x.mean(-1, keepdims=True)
        var = ((x - mu) ** 2).mean(-1, keepdims=True)
        return (x - mu) / jnp.sqrt(var + LN_EPS) * g + b

    causal = jnp.where(jnp.arange(S)[:, None] >= jnp.arange(S)[None, :], 0.0, NEG_INF)
    smask = jnp.broadcast_to(causal, (B, S, S))
    cmask = jnp.broadcast_to(
        jnp.where(encoder_valid[:, None, :] > 0.5, 0.0, NEG_INF), (B, S, T))

    sa_ctx = mha(hidden_states, hidden_states, p["sa_wq"], p["sa_bq"],
                 p["sa_wk"], p["sa_bk"], p["sa_wv"], p["sa_bv"], smask)
    sa_out = ln(sa_ctx @ p["sa_wo"] + p["sa_bo"] + hidden_states,
                p["sa_ln_g"], p["sa_ln_b"])

    ca_ctx = mha(sa_out, encoder_hidden_states, p["ca_wq"], p["ca_bq"],
                 p["ca_wk"], p["ca_bk"], p["ca_wv"], p["ca_bv"], cmask)
    ca_out = ln(ca_ctx @ p["ca_wo"] + p["ca_bo"] + sa_out,
                p["ca_ln_g"], p["ca_ln_b"])

    inter = jax.nn.gelu(ca_out @ p["ff_wi"] + p["ff_bi"], approximate=True)
    ffn = inter @ p["ff_wo"] + p["ff_bo"]
    return ln(ffn + ca_out, p["ff_ln_g"], p["ff_ln_b"])


# ------------------------------ parameter init --------------------------------
def _init_params(key, H=HIDDEN, I=INTERMEDIATE):
    names_w = [("sa_wq", (H, H)), ("sa_wk", (H, H)), ("sa_wv", (H, H)), ("sa_wo", (H, H)),
               ("ca_wq", (H, H)), ("ca_wk", (H, H)), ("ca_wv", (H, H)), ("ca_wo", (H, H)),
               ("ff_wi", (H, I)), ("ff_wo", (I, H))]
    names_b = [("sa_bq", H), ("sa_bk", H), ("sa_bv", H), ("sa_bo", H),
               ("ca_bq", H), ("ca_bk", H), ("ca_bv", H), ("ca_bo", H),
               ("ff_bi", I), ("ff_bo", H)]
    names_ln = [("sa_ln_g", H), ("sa_ln_b", H), ("ca_ln_g", H), ("ca_ln_b", H),
                ("ff_ln_g", H), ("ff_ln_b", H)]
    keys = iter(jax.random.split(key, len(names_w) + len(names_b) + len(names_ln)))
    params = {}
    for name, shape in names_w:
        params[name] = 0.02 * jax.random.normal(next(keys), shape, jnp.float32)
    for name, n in names_b:
        params[name] = 0.01 * jax.random.normal(next(keys), (n,), jnp.float32)
    for name, n in names_ln:
        if name.endswith("_g"):
            params[name] = 1.0 + 0.05 * jax.random.normal(next(keys), (n,), jnp.float32)
        else:
            params[name] = 0.02 * jax.random.normal(next(keys), (n,), jnp.float32)
    return params


# ------------------------------------ main -----------------------------------
if __name__ == "__main__":
    key = jax.random.PRNGKey(0)
    k_h, k_e, k_p = jax.random.split(key, 3)

    hidden_states = jax.random.normal(k_h, (BATCH, SEQ_DEC, HIDDEN), jnp.float32)
    encoder_hidden_states = jax.random.normal(k_e, (BATCH, SEQ_ENC, HIDDEN), jnp.float32)

    # encoder key-valid mask: batch 0 fully valid, batch 1 has last 4 keys padded.
    encoder_valid = jnp.stack([
        jnp.ones((SEQ_ENC,), jnp.float32),
        jnp.concatenate([jnp.ones((SEQ_ENC - 4,), jnp.float32),
                         jnp.zeros((4,), jnp.float32)]),
    ], axis=0)

    params = _init_params(k_p)

    out = transformer_decoder_layer(hidden_states, encoder_hidden_states,
                                    encoder_valid, params)
    out = jax.block_until_ready(out)

    ref = jax.block_until_ready(
        _reference(hidden_states, encoder_hidden_states, encoder_valid, params))

    # Tolerance: kernel uses bf16 MXU operands + approx reciprocal in softmax,
    # reference is full f32; post-LayerNorm outputs are O(1), errors are O(1e-3).
    np.testing.assert_allclose(np.asarray(out), np.asarray(ref), rtol=2e-2, atol=2e-2)

    print("KERNEL_OK")
</pallas_src>

<mosaic_0001>
module attributes {stable_mosaic.version = 11 : i64} {
  func.func @_decoder_layer_kernel(%arg0: memref<16x32xf32, #tpu.memory_space<vmem>>, %arg1: memref<32x32xf32, #tpu.memory_space<vmem>>, %arg2: memref<2x16xf32, #tpu.memory_space<vmem>>, %arg3: memref<32x96xbf16, #tpu.memory_space<vmem>>, %arg4: memref<32x64xbf16, #tpu.memory_space<vmem>>, %arg5: memref<3x32x32xbf16, #tpu.memory_space<vmem>>, %arg6: memref<32x64xbf16, #tpu.memory_space<vmem>>, %arg7: memref<64x32xbf16, #tpu.memory_space<vmem>>, %arg8: memref<13x96xf32, #tpu.memory_space<vmem>>, %arg9: memref<16x32xf32, #tpu.memory_space<vmem>>, %arg10: memref<16x32xf32, #tpu.memory_space<vmem>>) attributes {dimension_semantics = [], scalar_prefetch = 0 : i64, scratch_operands = 1 : i64, tpu.core_type = #tpu.core_type<tc>} {
    %c0 = arith.constant 0 : index
    %c0_0 = arith.constant 0 : index
    %0 = vector.load %arg0[%c0, %c0_0] : memref<16x32xf32, #tpu.memory_space<vmem>>, vector<16x32xf32>
    %c0_1 = arith.constant 0 : index
    %c0_2 = arith.constant 0 : index
    %1 = vector.load %arg1[%c0_1, %c0_2] : memref<32x32xf32, #tpu.memory_space<vmem>>, vector<32x32xf32>
    %2 = tpu.iota {dimensions = array<i32: 0>} : vector<8x8xi32>
    %3 = tpu.iota {dimensions = array<i32: 1>} : vector<8x8xi32>
    %4 = arith.cmpi sge, %2, %3 : vector<8x8xi32>
    %cst = arith.constant 0.000000e+00 : f32
    %cst_3 = arith.constant -1.000000e+09 : f32
    %5 = vector.broadcast %cst : f32 to vector<8x8xf32>
    %6 = vector.broadcast %cst_3 : f32 to vector<8x8xf32>
    %7 = arith.select %4, %5, %6 : vector<8x8xi1>, vector<8x8xf32>
    %c0_4 = arith.constant 0 : index
    %c0_5 = arith.constant 0 : index
    %8 = vector.load %arg3[%c0_4, %c0_5] : memref<32x96xbf16, #tpu.memory_space<vmem>>, vector<32x96xbf16>
    %9 = arith.truncf %0 : vector<16x32xf32> to vector<16x32xbf16>
    %cst_6 = arith.constant dense<0.000000e+00> : vector<16x96xf32>
    %10 = tpu.matmul %9, %8, %cst_6 {dimension_numbers = #tpu.dot_dimension_numbers<[1], [0], [0], [1], [0, 0, 1, 1], [], []>} : vector<16x32xbf16>, vector<32x96xbf16>, vector<16x96xf32> -> vector<16x96xf32>
    %c0_7 = arith.constant 0 : index
    %c0_8 = arith.constant 0 : index
    %11 = vector.load %arg8[%c0_7, %c0_8] : memref<13x96xf32, #tpu.memory_space<vmem>>, vector<1x96xf32>
    %12 = vector.broadcast %11 : vector<1x96xf32> to vector<16x96xf32>
    %13 = arith.addf %10, %12 : vector<16x96xf32>
    %14 = vector.extract_strided_slice %13 {offsets = [0, 0], sizes = [16, 32], strides = [1, 1]} : vector<16x96xf32> to vector<16x32xf32>
    %cst_9 = arith.constant 0.353553385 : f32
    %15 = vector.broadcast %cst_9 : f32 to vector<16x32xf32>
    %16 = arith.mulf %14, %15 : vector<16x32xf32>
    %17 = vector.extract_strided_slice %13 {offsets = [0, 32], sizes = [16, 32], strides = [1, 1]} : vector<16x96xf32> to vector<16x32xf32>
    %18 = vector.extract_strided_slice %13 {offsets = [0, 64], sizes = [16, 32], strides = [1, 1]} : vector<16x96xf32> to vector<16x32xf32>
    %19 = vector.extract_strided_slice %16 {offsets = [0, 0], sizes = [8, 8], strides = [1, 1]} : vector<16x32xf32> to vector<8x8xf32>
    %20 = vector.extract_strided_slice %17 {offsets = [0, 0], sizes = [8, 8], strides = [1, 1]} : vector<16x32xf32> to vector<8x8xf32>
    %21 = arith.truncf %19 : vector<8x8xf32> to vector<8x8xbf16>
    %22 = arith.truncf %20 : vector<8x8xf32> to vector<8x8xbf16>
    %cst_10 = arith.constant dense<0.000000e+00> : vector<8x8xf32>
    %23 = tpu.matmul %21, %22, %cst_10 {dimension_numbers = #tpu.dot_dimension_numbers<[1], [1], [0], [0], [0, 0, 1, 0], [], []>} : vector<8x8xbf16>, vector<8x8xbf16>, vector<8x8xf32> -> vector<8x8xf32>
    %24 = arith.addf %23, %7 : vector<8x8xf32>
    %cst_11 = arith.constant dense<0xFF800000> : vector<8xf32>
    %25 = vector.multi_reduction <maximumf>, %24, %cst_11 [1] : vector<8x8xf32> to vector<8xf32>
    %26 = vector.shape_cast %25 : vector<8xf32> to vector<8x1xf32>
    %27 = vector.broadcast %26 : vector<8x1xf32> to vector<8x8xf32>
    %28 = arith.subf %24, %27 : vector<8x8xf32>
    %29 = math.exp %28 : vector<8x8xf32>
    %cst_12 = arith.constant dense<0.000000e+00> : vector<8xf32>
    %30 = vector.multi_reduction <add>, %29, %cst_12 [1] : vector<8x8xf32> to vector<8xf32>
    %31 = vector.shape_cast %30 : vector<8xf32> to vector<8x1xf32>
    %32 = tpu.reciprocal %31 {approx = true} : vector<8x1xf32> -> vector<8x1xf32>
    %33 = vector.broadcast %32 : vector<8x1xf32> to vector<8x8xf32>
    %34 = arith.mulf %29, %33 : vector<8x8xf32>
    %35 = vector.extract_strided_slice %18 {offsets = [0, 0], sizes = [8, 8], strides = [1, 1]} : vector<16x32xf32> to vector<8x8xf32>
    %36 = arith.truncf %34 : vector<8x8xf32> to vector<8x8xbf16>
    %37 = arith.truncf %35 : vector<8x8xf32> to vector<8x8xbf16>
    %cst_13 = arith.constant dense<0.000000e+00> : vector<8x8xf32>
    %38 = tpu.matmul %36, %37, %cst_13 {dimension_numbers = #tpu.dot_dimension_numbers<[1], [0], [0], [1], [0, 0, 1, 1], [], []>} : vector<8x8xbf16>, vector<8x8xbf16>, vector<8x8xf32> -> vector<8x8xf32>
    %c0_14 = arith.constant 0 : index
    %c0_15 = arith.constant 0 : index
    %39 = vector.load %arg10[%c0_14, %c0_15] : memref<16x32xf32, #tpu.memory_space<vmem>>, vector<8x8xf32>
    tpu.vector_store %arg10[%c0_14, %c0_15], %38 {strides = array<i32>} : memref<16x32xf32, #tpu.memory_space<vmem>>, vector<8x8xf32>,
    %40 = vector.extract_strided_slice %16 {offsets = [0, 8], sizes = [8, 8], strides = [1, 1]} : vector<16x32xf32> to vector<8x8xf32>
    %41 = vector.extract_strided_slice %17 {offsets = [0, 8], sizes = [8, 8], strides = [1, 1]} : vector<16x32xf32> to vector<8x8xf32>
    %42 = arith.truncf %40 : vector<8x8xf32> to vector<8x8xbf16>
    %43 = arith.truncf %41 : vector<8x8xf32> to vector<8x8xbf16>
    %cst_16 = arith.constant dense<0.000000e+00> : vector<8x8xf32>
    %44 = tpu.matmul %42, %43, %cst_16 {dimension_numbers = #tpu.dot_dimension_numbers<[1], [1], [0], [0], [0, 0, 1, 0], [], []>} : vector<8x8xbf16>, vector<8x8xbf16>, vector<8x8xf32> -> vector<8x8xf32>
    %45 = arith.addf %44, %7 : vector<8x8xf32>
    %cst_17 = arith.constant dense<0xFF800000> : vector<8xf32>
    %46 = vector.multi_reduction <maximumf>, %45, %cst_17 [1] : vector<8x8xf32> to vector<8xf32>
    %47 = vector.shape_cast %46 : vector<8xf32> to vector<8x1xf32>
    %48 = vector.broadcast %47 : vector<8x1xf32> to vector<8x8xf32>
    %49 = arith.subf %45, %48 : vector<8x8xf32>
    %50 = math.exp %49 : vector<8x8xf32>
    %cst_18 = arith.constant dense<0.000000e+00> : vector<8xf32>
    %51 = vector.multi_reduction <add>, %50, %cst_18 [1] : vector<8x8xf32> to vector<8xf32>
    %52 = vector.shape_cast %51 : vector<8xf32> to vector<8x1xf32>
    %53 = tpu.reciprocal %52 {approx = true} : vector<8x1xf32> -> vector<8x1xf32>
    %54 = vector.broadcast %53 : vector<8x1xf32> to vector<8x8xf32>
    %55 = arith.mulf %50, %54 : vector<8x8xf32>
    %56 = vector.extract_strided_slice %18 {offsets = [0, 8], sizes = [8, 8], strides = [1, 1]} : vector<16x32xf32> to vector<8x8xf32>
    %57 = arith.truncf %55 : vector<8x8xf32> to vector<8x8xbf16>
    %58 = arith.truncf %56 : vector<8x8xf32> to vector<8x8xbf16>
    %cst_19 = arith.constant dense<0.000000e+00> : vector<8x8xf32>
    %59 = tpu.matmul %57, %58, %cst_19 {dimension_numbers = #tpu.dot_dimension_numbers<[1], [0], [0], [1], [0, 0, 1, 1], [], []>} : vector<8x8xbf16>, vector<8x8xbf16>, vector<8x8xf32> -> vector<8x8xf32>
    %c0_20 = arith.constant 0 : index
    %c8 = arith.constant 8 : index
    %60 = vector.load %arg10[%c0_20, %c8] : memref<16x32xf32, #tpu.memory_space<vmem>>, vector<8x8xf32>
    tpu.vector_store %arg10[%c0_20, %c8], %59 {strides = array<i32>} : memref<16x32xf32, #tpu.memory_space<vmem>>, vector<8x8xf32>,
    %61 = vector.extract_strided_slice %16 {offsets = [0, 16], sizes = [8, 8], strides = [1, 1]} : vector<16x32xf32> to vector<8x8xf32>
    %62 = vector.extract_strided_slice %17 {offsets = [0, 16], sizes = [8, 8], strides = [1, 1]} : vector<16x32xf32> to vector<8x8xf32>
    %63 = arith.truncf %61 : vector<8x8xf32> to vector<8x8xbf16>
    %64 = arith.truncf %62 : vector<8x8xf32> to vector<8x8xbf16>
    %cst_21 = arith.constant dense<0.000000e+00> : vector<8x8xf32>
    %65 = tpu.matmul %63, %64, %cst_21 {dimension_numbers = #tpu.dot_dimension_numbers<[1], [1], [0], [0], [0, 0, 1, 0], [], []>} : vector<8x8xbf16>, vector<8x8xbf16>, vector<8x8xf32> -> vector<8x8xf32>
    %66 = arith.addf %65, %7 : vector<8x8xf32>
    %cst_22 = arith.constant dense<0xFF800000> : vector<8xf32>
    %67 = vector.multi_reduction <maximumf>, %66, %cst_22 [1] : vector<8x8xf32> to vector<8xf32>
    %68 = vector.shape_cast %67 : vector<8xf32> to vector<8x1xf32>
    %69 = vector.broadcast %68 : vector<8x1xf32> to vector<8x8xf32>
    %70 = arith.subf %66, %69 : vector<8x8xf32>
    %71 = math.exp %70 : vector<8x8xf32>
    %cst_23 = arith.constant dense<0.000000e+00> : vector<8xf32>
    %72 = vector.multi_reduction <add>, %71, %cst_23 [1] : vector<8x8xf32> to vector<8xf32>
    %73 = vector.shape_cast %72 : vector<8xf32> to vector<8x1xf32>
    %74 = tpu.reciprocal %73 {approx = true} : vector<8x1xf32> -> vector<8x1xf32>
    %75 = vector.broadcast %74 : vector<8x1xf32> to vector<8x8xf32>
    %76 = arith.mulf %71, %75 : vector<8x8xf32>
    %77 = vector.extract_strided_slice %18 {offsets = [0, 16], sizes = [8, 8], strides = [1, 1]} : vector<16x32xf32> to vector<8x8xf32>
    %78 = arith.truncf %76 : vector<8x8xf32> to vector<8x8xbf16>
    %79 = arith.truncf %77 : vector<8x8xf32> to vector<8x8xbf16>
    %cst_24 = arith.constant dense<0.000000e+00> : vector<8x8xf32>
    %80 = tpu.matmul %78, %79, %cst_24 {dimension_numbers = #tpu.dot_dimension_numbers<[1], [0], [0], [1], [0, 0, 1, 1], [], []>} : vector<8x8xbf16>, vector<8x8xbf16>, vector<8x8xf32> -> vector<8x8xf32>
    %c0_25 = arith.constant 0 : index
    %c16 = arith.constant 16 : index
    %81 = vector.load %arg10[%c0_25, %c16] : memref<16x32xf32, #tpu.memory_space<vmem>>, vector<8x8xf32>
    tpu.vector_store %arg10[%c0_25, %c16], %80 {strides = array<i32>} : memref<16x32xf32, #tpu.memory_space<vmem>>, vector<8x8xf32>,
    %82 = vector.extract_strided_slice %16 {offsets = [0, 24], sizes = [8, 8], strides = [1, 1]} : vector<16x32xf32> to vector<8x8xf32>
    %83 = vector.extract_strided_slice %17 {offsets = [0, 24], sizes = [8, 8], strides = [1, 1]} : vector<16x32xf32> to vector<8x8xf32>
    %84 = arith.truncf %82 : vector<8x8xf32> to vector<8x8xbf16>
    %85 = arith.truncf %83 : vector<8x8xf32> to vector<8x8xbf16>
    %cst_26 = arith.constant dense<0.000000e+00> : vector<8x8xf32>
    %86 = tpu.matmul %84, %85, %cst_26 {dimension_numbers = #tpu.dot_dimension_numbers<[1], [1], [0], [0], [0, 0, 1, 0], [], []>} : vector<8x8xbf16>, vector<8x8xbf16>, vector<8x8xf32> -> vector<8x8xf32>
    %87 = arith.addf %86, %7 : vector<8x8xf32>
    %cst_27 = arith.constant dense<0xFF800000> : vector<8xf32>
    %88 = vector.multi_reduction <maximumf>, %87, %cst_27 [1] : vector<8x8xf32> to vector<8xf32>
    %89 = vector.shape_cast %88 : vector<8xf32> to vector<8x1xf32>
    %90 = vector.broadcast %89 : vector<8x1xf32> to vector<8x8xf32>
    %91 = arith.subf %87, %90 : vector<8x8xf32>
    %92 = math.exp %91 : vector<8x8xf32>
    %cst_28 = arith.constant dense<0.000000e+00> : vector<8xf32>
    %93 = vector.multi_reduction <add>, %92, %cst_28 [1] : vector<8x8xf32> to vector<8xf32>
    %94 = vector.shape_cast %93 : vector<8xf32> to vector<8x1xf32>
    %95 = tpu.reciprocal %94 {approx = true} : vector<8x1xf32> -> vector<8x1xf32>
    %96 = vector.broadcast %95 : vector<8x1xf32> to vector<8x8xf32>
    %97 = arith.mulf %92, %96 : vector<8x8xf32>
    %98 = vector.extract_strided_slice %18 {offsets = [0, 24], sizes = [8, 8], strides = [1, 1]} : vector<16x32xf32> to vector<8x8xf32>
    %99 = arith.truncf %97 : vector<8x8xf32> to vector<8x8xbf16>
    %100 = arith.truncf %98 : vector<8x8xf32> to vector<8x8xbf16>
    %cst_29 = arith.constant dense<0.000000e+00> : vector<8x8xf32>
    %101 = tpu.matmul %99, %100, %cst_29 {dimension_numbers = #tpu.dot_dimension_numbers<[1], [0], [0], [1], [0, 0, 1, 1], [], []>} : vector<8x8xbf16>, vector<8x8xbf16>, vector<8x8xf32> -> vector<8x8xf32>
    %c0_30 = arith.constant 0 : index
    %c24 = arith.constant 24 : index
    %102 = vector.load %arg10[%c0_30, %c24] : memref<16x32xf32, #tpu.memory_space<vmem>>, vector<8x8xf32>
    tpu.vector_store %arg10[%c0_30, %c24], %101 {strides = array<i32>} : memref<16x32xf32, #tpu.memory_space<vmem>>, vector<8x8xf32>,
    %103 = vector.extract_strided_slice %16 {offsets = [8, 0], sizes = [8, 8], strides = [1, 1]} : vector<16x32xf32> to vector<8x8xf32>
    %104 = vector.extract_strided_slice %17 {offsets = [8, 0], sizes = [8, 8], strides = [1, 1]} : vector<16x32xf32> to vector<8x8xf32>
    %105 = arith.truncf %103 : vector<8x8xf32> to vector<8x8xbf16>
    %106 = arith.truncf %104 : vector<8x8xf32> to vector<8x8xbf16>
    %cst_31 = arith.constant dense<0.000000e+00> : vector<8x8xf32>
    %107 = tpu.matmul %105, %106, %cst_31 {dimension_numbers = #tpu.dot_dimension_numbers<[1], [1], [0], [0], [0, 0, 1, 0], [], []>} : vector<8x8xbf16>, vector<8x8xbf16>, vector<8x8xf32> -> vector<8x8xf32>
    %108 = arith.addf %107, %7 : vector<8x8xf32>
    %cst_32 = arith.constant dense<0xFF800000> : vector<8xf32>
    %109 = vector.multi_reduction <maximumf>, %108, %cst_32 [1] : vector<8x8xf32> to vector<8xf32>
    %110 = vector.shape_cast %109 : vector<8xf32> to vector<8x1xf32>
    %111 = vector.broadcast %110 : vector<8x1xf32> to vector<8x8xf32>
    %112 = arith.subf %108, %111 : vector<8x8xf32>
    %113 = math.exp %112 : vector<8x8xf32>
    %cst_33 = arith.constant dense<0.000000e+00> : vector<8xf32>
    %114 = vector.multi_reduction <add>, %113, %cst_33 [1] : vector<8x8xf32> to vector<8xf32>
    %115 = vector.shape_cast %114 : vector<8xf32> to vector<8x1xf32>
    %116 = tpu.reciprocal %115 {approx = true} : vector<8x1xf32> -> vector<8x1xf32>
    %117 = vector.broadcast %116 : vector<8x1xf32> to vector<8x8xf32>
    %118 = arith.mulf %113, %117 : vector<8x8xf32>
    %119 = vector.extract_strided_slice %18 {offsets = [8, 0], sizes = [8, 8], strides = [1, 1]} : vector<16x32xf32> to vector<8x8xf32>
    %120 = arith.truncf %118 : vector<8x8xf32> to vector<8x8xbf16>
    %121 = arith.truncf %119 : vector<8x8xf32> to vector<8x8xbf16>
    %cst_34 = arith.constant dense<0.000000e+00> : vector<8x8xf32>
    %122 = tpu.matmul %120, %121, %cst_34 {dimension_numbers = #tpu.dot_dimension_numbers<[1], [0], [0], [1], [0, 0, 1, 1], [], []>} : vector<8x8xbf16>, vector<8x8xbf16>, vector<8x8xf32> -> vector<8x8xf32>
    %c8_35 = arith.constant 8 : index
    %c0_36 = arith.constant 0 : index
    %123 = vector.load %arg10[%c8_35, %c0_36] : memref<16x32xf32, #tpu.memory_space<vmem>>, vector<8x8xf32>
    tpu.vector_store %arg10[%c8_35, %c0_36], %122 {strides = array<i32>} : memref<16x32xf32, #tpu.memory_space<vmem>>, vector<8x8xf32>,
    %124 = vector.extract_strided_slice %16 {offsets = [8, 8], sizes = [8, 8], strides = [1, 1]} : vector<16x32xf32> to vector<8x8xf32>
    %125 = vector.extract_strided_slice %17 {offsets = [8, 8], sizes = [8, 8], strides = [1, 1]} : vector<16x32xf32> to vector<8x8xf32>
    %126 = arith.truncf %124 : vector<8x8xf32> to vector<8x8xbf16>
    %127 = arith.truncf %125 : vector<8x8xf32> to vector<8x8xbf16>
    %cst_37 = arith.constant dense<0.000000e+00> : vector<8x8xf32>
    %128 = tpu.matmul %126, %127, %cst_37 {dimension_numbers = #tpu.dot_dimension_numbers<[1], [1], [0], [0], [0, 0, 1, 0], [], []>} : vector<8x8xbf16>, vector<8x8xbf16>, vector<8x8xf32> -> vector<8x8xf32>
    %129 = arith.addf %128, %7 : vector<8x8xf32>
    %cst_38 = arith.constant dense<0xFF800000> : vector<8xf32>
    %130 = vector.multi_reduction <maximumf>, %129, %cst_38 [1] : vector<8x8xf32> to vector<8xf32>
    %131 = vector.shape_cast %130 : vector<8xf32> to vector<8x1xf32>
    %132 = vector.broadcast %131 : vector<8x1xf32> to vector<8x8xf32>
    %133 = arith.subf %129, %132 : vector<8x8xf32>
    %134 = math.exp %133 : vector<8x8xf32>
    %cst_39 = arith.constant dense<0.000000e+00> : vector<8xf32>
    %135 = vector.multi_reduction <add>, %134, %cst_39 [1] : vector<8x8xf32> to vector<8xf32>
    %136 = vector.shape_cast %135 : vector<8xf32> to vector<8x1xf32>
    %137 = tpu.reciprocal %136 {approx = true} : vector<8x1xf32> -> vector<8x1xf32>
    %138 = vector.broadcast %137 : vector<8x1xf32> to vector<8x8xf32>
    %139 = arith.mulf %134, %138 : vector<8x8xf32>
    %140 = vector.extract_strided_slice %18 {offsets = [8, 8], sizes = [8, 8], strides = [1, 1]} : vector<16x32xf32> to vector<8x8xf32>
    %141 = arith.truncf %139 : vector<8x8xf32> to vector<8x8xbf16>
    %142 = arith.truncf %140 : vector<8x8xf32> to vector<8x8xbf16>
    %cst_40 = arith.constant dense<0.000000e+00> : vector<8x8xf32>
    %143 = tpu.matmul %141, %142, %cst_40 {dimension_numbers = #tpu.dot_dimension_numbers<[1], [0], [0], [1], [0, 0, 1, 1], [], []>} : vector<8x8xbf16>, vector<8x8xbf16>, vector<8x8xf32> -> vector<8x8xf32>
    %c8_41 = arith.constant 8 : index
    %c8_42 = arith.constant 8 : index
    %144 = vector.load %arg10[%c8_41, %c8_42] : memref<16x32xf32, #tpu.memory_space<vmem>>, vector<8x8xf32>
    tpu.vector_store %arg10[%c8_41, %c8_42], %143 {strides = array<i32>} : memref<16x32xf32, #tpu.memory_space<vmem>>, vector<8x8xf32>,
    %145 = vector.extract_strided_slice %16 {offsets = [8, 16], sizes = [8, 8], strides = [1, 1]} : vector<16x32xf32> to vector<8x8xf32>
    %146 = vector.extract_strided_slice %17 {offsets = [8, 16], sizes = [8, 8], strides = [1, 1]} : vector<16x32xf32> to vector<8x8xf32>
    %147 = arith.truncf %145 : vector<8x8xf32> to vector<8x8xbf16>
    %148 = arith.truncf %146 : vector<8x8xf32> to vector<8x8xbf16>
    %cst_43 = arith.constant dense<0.000000e+00> : vector<8x8xf32>
    %149 = tpu.matmul %147, %148, %cst_43 {dimension_numbers = #tpu.dot_dimension_numbers<[1], [1], [0], [0], [0, 0, 1, 0], [], []>} : vector<8x8xbf16>, vector<8x8xbf16>, vector<8x8xf32> -> vector<8x8xf32>
    %150 = arith.addf %149, %7 : vector<8x8xf32>
    %cst_44 = arith.constant dense<0xFF800000> : vector<8xf32>
    %151 = vector.multi_reduction <maximumf>, %150, %cst_44 [1] : vector<8x8xf32> to vector<8xf32>
    %152 = vector.shape_cast %151 : vector<8xf32> to vector<8x1xf32>
    %153 = vector.broadcast %152 : vector<8x1xf32> to vector<8x8xf32>
    %154 = arith.subf %150, %153 : vector<8x8xf32>
    %155 = math.exp %154 : vector<8x8xf32>
    %cst_45 = arith.constant dense<0.000000e+00> : vector<8xf32>
    %156 = vector.multi_reduction <add>, %155, %cst_45 [1] : vector<8x8xf32> to vector<8xf32>
    %157 = vector.shape_cast %156 : vector<8xf32> to vector<8x1xf32>
    %158 = tpu.reciprocal %157 {approx = true} : vector<8x1xf32> -> vector<8x1xf32>
    %159 = vector.broadcast %158 : vector<8x1xf32> to vector<8x8xf32>
    %160 = arith.mulf %155, %159 : vector<8x8xf32>
    %161 = vector.extract_strided_slice %18 {offsets = [8, 16], sizes = [8, 8], strides = [1, 1]} : vector<16x32xf32> to vector<8x8xf32>
    %162 = arith.truncf %160 : vector<8x8xf32> to vector<8x8xbf16>
    %163 = arith.truncf %161 : vector<8x8xf32> to vector<8x8xbf16>
    %cst_46 = arith.constant dense<0.000000e+00> : vector<8x8xf32>
    %164 = tpu.matmul %162, %163, %cst_46 {dimension_numbers = #tpu.dot_dimension_numbers<[1], [0], [0], [1], [0, 0, 1, 1], [], []>} : vector<8x8xbf16>, vector<8x8xbf16>, vector<8x8xf32> -> vector<8x8xf32>
    %c8_47 = arith.constant 8 : index
    %c16_48 = arith.constant 16 : index
    %165 = vector.load %arg10[%c8_47, %c16_48] : memref<16x32xf32, #tpu.memory_space<vmem>>, vector<8x8xf32>
    tpu.vector_store %arg10[%c8_47, %c16_48], %164 {strides = array<i32>} : memref<16x32xf32, #tpu.memory_space<vmem>>, vector<8x8xf32>,
    %166 = vector.extract_strided_slice %16 {offsets = [8, 24], sizes = [8, 8], strides = [1, 1]} : vector<16x32xf32> to vector<8x8xf32>
    %167 = vector.extract_strided_slice %17 {offsets = [8, 24], sizes = [8, 8], strides = [1, 1]} : vector<16x32xf32> to vector<8x8xf32>
    %168 = arith.truncf %166 : vector<8x8xf32> to vector<8x8xbf16>
    %169 = arith.truncf %167 : vector<8x8xf32> to vector<8x8xbf16>
    %cst_49 = arith.constant dense<0.000000e+00> : vector<8x8xf32>
    %170 = tpu.matmul %168, %169, %cst_49 {dimension_numbers = #tpu.dot_dimension_numbers<[1], [1], [0], [0], [0, 0, 1, 0], [], []>} : vector<8x8xbf16>, vector<8x8xbf16>, vector<8x8xf32> -> vector<8x8xf32>
    %171 = arith.addf %170, %7 : vector<8x8xf32>
    %cst_50 = arith.constant dense<0xFF800000> : vector<8xf32>
    %172 = vector.multi_reduction <maximumf>, %171, %cst_50 [1] : vector<8x8xf32> to vector<8xf32>
    %173 = vector.shape_cast %172 : vector<8xf32> to vector<8x1xf32>
    %174 = vector.broadcast %173 : vector<8x1xf32> to vector<8x8xf32>
    %175 = arith.subf %171, %174 : vector<8x8xf32>
    %176 = math.exp %175 : vector<8x8xf32>
    %cst_51 = arith.constant dense<0.000000e+00> : vector<8xf32>
    %177 = vector.multi_reduction <add>, %176, %cst_51 [1] : vector<8x8xf32> to vector<8xf32>
    %178 = vector.shape_cast %177 : vector<8xf32> to vector<8x1xf32>
    %179 = tpu.reciprocal %178 {approx = true} : vector<8x1xf32> -> vector<8x1xf32>
    %180 = vector.broadcast %179 : vector<8x1xf32> to vector<8x8xf32>
    %181 = arith.mulf %176, %180 : vector<8x8xf32>
    %182 = vector.extract_strided_slice %18 {offsets = [8, 24], sizes = [8, 8], strides = [1, 1]} : vector<16x32xf32> to vector<8x8xf32>
    %183 = arith.truncf %181 : vector<8x8xf32> to vector<8x8xbf16>
    %184 = arith.truncf %182 : vector<8x8xf32> to vector<8x8xbf16>
    %cst_52 = arith.constant dense<0.000000e+00> : vector<8x8xf32>
    %185 = tpu.matmul %183, %184, %cst_52 {dimension_numbers = #tpu.dot_dimension_numbers<[1], [0], [0], [1], [0, 0, 1, 1], [], []>} : vector<8x8xbf16>, vector<8x8xbf16>, vector<8x8xf32> -> vector<8x8xf32>
    %c8_53 = arith.constant 8 : index
    %c24_54 = arith.constant 24 : index
    %186 = vector.load %arg10[%c8_53, %c24_54] : memref<16x32xf32, #tpu.memory_space<vmem>>, vector<8x8xf32>
    tpu.vector_store %arg10[%c8_53, %c24_54], %185 {strides = array<i32>} : memref<16x32xf32, #tpu.memory_space<vmem>>, vector<8x8xf32>,
    %c0_55 = arith.constant 0 : index
    %c0_56 = arith.constant 0 : index
    %187 = vector.load %arg10[%c0_55, %c0_56] : memref<16x32xf32, #tpu.memory_space<vmem>>, vector<16x32xf32>
    %c0_57 = arith.constant 0 : index
    %c0_58 = arith.constant 0 : index
    %c0_59 = arith.constant 0 : index
    %188 = vector.load %arg5[%c0_57, %c0_58, %c0_59] : memref<3x32x32xbf16, #tpu.memory_space<vmem>>, vector<1x32x32xbf16>
    %189 = vector.shape_cast %188 : vector<1x32x32xbf16> to vector<32x32xbf16>
    %190 = arith.truncf %187 : vector<16x32xf32> to vector<16x32xbf16>
    %cst_60 = arith.constant dense<0.000000e+00> : vector<16x32xf32>
    %191 = tpu.matmul %190, %189, %cst_60 {dimension_numbers = #tpu.dot_dimension_numbers<[1], [0], [0], [1], [0, 0, 1, 1], [], []>} : vector<16x32xbf16>, vector<32x32xbf16>, vector<16x32xf32> -> vector<16x32xf32>
    %c1 = arith.constant 1 : index
    %c0_61 = arith.constant 0 : index
    %192 = vector.load %arg8[%c1, %c0_61] : memref<13x96xf32, #tpu.memory_space<vmem>>, vector<1x32xf32>
    %193 = vector.broadcast %192 : vector<1x32xf32> to vector<16x32xf32>
    %194 = arith.addf %191, %193 : vector<16x32xf32>
    %195 = arith.addf %194, %0 : vector<16x32xf32>
    %c2 = arith.constant 2 : index
    %c0_62 = arith.constant 0 : index
    %196 = vector.load %arg8[%c2, %c0_62] : memref<13x96xf32, #tpu.memory_space<vmem>>, vector<1x32xf32>
    %c3 = arith.constant 3 : index
    %c0_63 = arith.constant 0 : index
    %197 = vector.load %arg8[%c3, %c0_63] : memref<13x96xf32, #tpu.memory_space<vmem>>, vector<1x32xf32>
    %cst_64 = arith.constant dense<0.000000e+00> : vector<16xf32>
    %198 = vector.multi_reduction <add>, %195, %cst_64 [1] : vector<16x32xf32> to vector<16xf32>
    %199 = vector.shape_cast %198 : vector<16xf32> to vector<16x1xf32>
    %cst_65 = arith.constant 3.200000e+01 : f32
    %200 = vector.broadcast %cst_65 : f32 to vector<16x1xf32>
    %201 = arith.divf %199, %200 : vector<16x1xf32>
    %202 = vector.broadcast %201 : vector<16x1xf32> to vector<16x32xf32>
    %203 = arith.subf %195, %202 : vector<16x32xf32>
    %204 = arith.mulf %203, %203 : vector<16x32xf32>
    %cst_66 = arith.constant dense<0.000000e+00> : vector<16xf32>
    %205 = vector.multi_reduction <add>, %204, %cst_66 [1] : vector<16x32xf32> to vector<16xf32>
    %206 = vector.shape_cast %205 : vector<16xf32> to vector<16x1xf32>
    %cst_67 = arith.constant 3.200000e+01 : f32
    %207 = vector.broadcast %cst_67 : f32 to vector<16x1xf32>
    %208 = arith.divf %206, %207 : vector<16x1xf32>
    %cst_68 = arith.constant 9.99999996E-13 : f32
    %209 = vector.broadcast %cst_68 : f32 to vector<16x1xf32>
    %210 = arith.addf %208, %209 : vector<16x1xf32>
    %211 = math.rsqrt %210 : vector<16x1xf32>
    %212 = vector.broadcast %211 : vector<16x1xf32> to vector<16x32xf32>
    %213 = arith.mulf %203, %212 : vector<16x32xf32>
    %214 = vector.broadcast %196 : vector<1x32xf32> to vector<16x32xf32>
    %215 = arith.mulf %213, %214 : vector<16x32xf32>
    %216 = vector.broadcast %197 : vector<1x32xf32> to vector<16x32xf32>
    %217 = arith.addf %215, %216 : vector<16x32xf32>
    %c1_69 = arith.constant 1 : index
    %c0_70 = arith.constant 0 : index
    %c0_71 = arith.constant 0 : index
    %218 = vector.load %arg5[%c1_69, %c0_70, %c0_71] : memref<3x32x32xbf16, #tpu.memory_space<vmem>>, vector<1x32x32xbf16>
    %219 = vector.shape_cast %218 : vector<1x32x32xbf16> to vector<32x32xbf16>
    %220 = arith.truncf %217 : vector<16x32xf32> to vector<16x32xbf16>
    %cst_72 = arith.constant dense<0.000000e+00> : vector<16x32xf32>
    %221 = tpu.matmul %220, %219, %cst_72 {dimension_numbers = #tpu.dot_dimension_numbers<[1], [0], [0], [1], [0, 0, 1, 1], [], []>} : vector<16x32xbf16>, vector<32x32xbf16>, vector<16x32xf32> -> vector<16x32xf32>
    %c4 = arith.constant 4 : index
    %c0_73 = arith.constant 0 : index
    %222 = vector.load %arg8[%c4, %c0_73] : memref<13x96xf32, #tpu.memory_space<vmem>>, vector<1x32xf32>
    %223 = vector.broadcast %222 : vector<1x32xf32> to vector<16x32xf32>
    %224 = arith.addf %221, %223 : vector<16x32xf32>
    %cst_74 = arith.constant 0.353553385 : f32
    %225 = vector.broadcast %cst_74 : f32 to vector<16x32xf32>
    %226 = arith.mulf %224, %225 : vector<16x32xf32>
    %c0_75 = arith.constant 0 : index
    %c0_76 = arith.constant 0 : index
    %227 = vector.load %arg4[%c0_75, %c0_76] : memref<32x64xbf16, #tpu.memory_space<vmem>>, vector<32x64xbf16>
    %228 = arith.truncf %1 : vector<32x32xf32> to vector<32x32xbf16>
    %cst_77 = arith.constant dense<0.000000e+00> : vector<32x64xf32>
    %229 = tpu.matmul %228, %227, %cst_77 {dimension_numbers = #tpu.dot_dimension_numbers<[1], [0], [0], [1], [0, 0, 1, 1], [], []>} : vector<32x32xbf16>, vector<32x64xbf16>, vector<32x64xf32> -> vector<32x64xf32>
    %c5 = arith.constant 5 : index
    %c0_78 = arith.constant 0 : index
    %230 = vector.load %arg8[%c5, %c0_78] : memref<13x96xf32, #tpu.memory_space<vmem>>, vector<1x64xf32>
    %231 = vector.broadcast %230 : vector<1x64xf32> to vector<32x64xf32>
    %232 = arith.addf %229, %231 : vector<32x64xf32>
    %233 = vector.extract_strided_slice %232 {offsets = [0, 0], sizes = [32, 32], strides = [1, 1]} : vector<32x64xf32> to vector<32x32xf32>
    %234 = vector.extract_strided_slice %232 {offsets = [0, 32], sizes = [32, 32], strides = [1, 1]} : vector<32x64xf32> to vector<32x32xf32>
    %c0_79 = arith.constant 0 : index
    %c0_80 = arith.constant 0 : index
    %235 = vector.load %arg2[%c0_79, %c0_80] : memref<2x16xf32, #tpu.memory_space<vmem>>, vector<1x16xf32>
    %cst_81 = arith.constant 5.000000e-01 : f32
    %236 = vector.broadcast %cst_81 : f32 to vector<1x16xf32>
    %237 = arith.cmpf ogt, %235, %236 : vector<1x16xf32>
    %cst_82 = arith.constant 0.000000e+00 : f32
    %cst_83 = arith.constant -1.000000e+09 : f32
    %238 = vector.broadcast %cst_82 : f32 to vector<1x16xf32>
    %239 = vector.broadcast %cst_83 : f32 to vector<1x16xf32>
    %240 = arith.select %237, %238, %239 : vector<1x16xi1>, vector<1x16xf32>
    %241 = vector.extract_strided_slice %226 {offsets = [0, 0], sizes = [8, 8], strides = [1, 1]} : vector<16x32xf32> to vector<8x8xf32>
    %242 = vector.extract_strided_slice %233 {offsets = [0, 0], sizes = [16, 8], strides = [1, 1]} : vector<32x32xf32> to vector<16x8xf32>
    %243 = arith.truncf %241 : vector<8x8xf32> to vector<8x8xbf16>
    %244 = arith.truncf %242 : vector<16x8xf32> to vector<16x8xbf16>
    %cst_84 = arith.constant dense<0.000000e+00> : vector<8x16xf32>
    %245 = tpu.matmul %243, %244, %cst_84 {dimension_numbers = #tpu.dot_dimension_numbers<[1], [1], [0], [0], [0, 0, 1, 0], [], []>} : vector<8x8xbf16>, vector<16x8xbf16>, vector<8x16xf32> -> vector<8x16xf32>
    %246 = vector.broadcast %240 : vector<1x16xf32> to vector<8x16xf32>
    %247 = arith.addf %245, %246 : vector<8x16xf32>
    %cst_85 = arith.constant dense<0xFF800000> : vector<8xf32>
    %248 = vector.multi_reduction <maximumf>, %247, %cst_85 [1] : vector<8x16xf32> to vector<8xf32>
    %249 = vector.shape_cast %248 : vector<8xf32> to vector<8x1xf32>
    %250 = vector.broadcast %249 : vector<8x1xf32> to vector<8x16xf32>
    %251 = arith.subf %247, %250 : vector<8x16xf32>
    %252 = math.exp %251 : vector<8x16xf32>
    %cst_86 = arith.constant dense<0.000000e+00> : vector<8xf32>
    %253 = vector.multi_reduction <add>, %252, %cst_86 [1] : vector<8x16xf32> to vector<8xf32>
    %254 = vector.shape_cast %253 : vector<8xf32> to vector<8x1xf32>
    %255 = tpu.reciprocal %254 {approx = true} : vector<8x1xf32> -> vector<8x1xf32>
    %256 = vector.broadcast %255 : vector<8x1xf32> to vector<8x16xf32>
    %257 = arith.mulf %252, %256 : vector<8x16xf32>
    %258 = vector.extract_strided_slice %234 {offsets = [0, 0], sizes = [16, 8], strides = [1, 1]} : vector<32x32xf32> to vector<16x8xf32>
    %259 = arith.truncf %257 : vector<8x16xf32> to vector<8x16xbf16>
    %260 = arith.truncf %258 : vector<16x8xf32> to vector<16x8xbf16>
    %cst_87 = arith.constant dense<0.000000e+00> : vector<8x8xf32>
    %261 = tpu.matmul %259, %260, %cst_87 {dimension_numbers = #tpu.dot_dimension_numbers<[1], [0], [0], [1], [0, 0, 1, 1], [], []>} : vector<8x16xbf16>, vector<16x8xbf16>, vector<8x8xf32> -> vector<8x8xf32>
    %c0_88 = arith.constant 0 : index
    %c0_89 = arith.constant 0 : index
    %262 = vector.load %arg10[%c0_88, %c0_89] : memref<16x32xf32, #tpu.memory_space<vmem>>, vector<8x8xf32>
    tpu.vector_store %arg10[%c0_88, %c0_89], %261 {strides = array<i32>} : memref<16x32xf32, #tpu.memory_space<vmem>>, vector<8x8xf32>,
    %263 = vector.extract_strided_slice %226 {offsets = [0, 8], sizes = [8, 8], strides = [1, 1]} : vector<16x32xf32> to vector<8x8xf32>
    %264 = vector.extract_strided_slice %233 {offsets = [0, 8], sizes = [16, 8], strides = [1, 1]} : vector<32x32xf32> to vector<16x8xf32>
    %265 = arith.truncf %263 : vector<8x8xf32> to vector<8x8xbf16>
    %266 = arith.truncf %264 : vector<16x8xf32> to vector<16x8xbf16>
    %cst_90 = arith.constant dense<0.000000e+00> : vector<8x16xf32>
    %267 = tpu.matmul %265, %266, %cst_90 {dimension_numbers = #tpu.dot_dimension_numbers<[1], [1], [0], [0], [0, 0, 1, 0], [], []>} : vector<8x8xbf16>, vector<16x8xbf16>, vector<8x16xf32> -> vector<8x16xf32>
    %268 = vector.broadcast %240 : vector<1x16xf32> to vector<8x16xf32>
    %269 = arith.addf %267, %268 : vector<8x16xf32>
    %cst_91 = arith.constant dense<0xFF800000> : vector<8xf32>
    %270 = vector.multi_reduction <maximumf>, %269, %cst_91 [1] : vector<8x16xf32> to vector<8xf32>
    %271 = vector.shape_cast %270 : vector<8xf32> to vector<8x1xf32>
    %272 = vector.broadcast %271 : vector<8x1xf32> to vector<8x16xf32>
    %273 = arith.subf %269, %272 : vector<8x16xf32>
    %274 = math.exp %273 : vector<8x16xf32>
    %cst_92 = arith.constant dense<0.000000e+00> : vector<8xf32>
    %275 = vector.multi_reduction <add>, %274, %cst_92 [1] : vector<8x16xf32> to vector<8xf32>
    %276 = vector.shape_cast %275 : vector<8xf32> to vector<8x1xf32>
    %277 = tpu.reciprocal %276 {approx = true} : vector<8x1xf32> -> vector<8x1xf32>
    %278 = vector.broadcast %277 : vector<8x1xf32> to vector<8x16xf32>
    %279 = arith.mulf %274, %278 : vector<8x16xf32>
    %280 = vector.extract_strided_slice %234 {offsets = [0, 8], sizes = [16, 8], strides = [1, 1]} : vector<32x32xf32> to vector<16x8xf32>
    %281 = arith.truncf %279 : vector<8x16xf32> to vector<8x16xbf16>
    %282 = arith.truncf %280 : vector<16x8xf32> to vector<16x8xbf16>
    %cst_93 = arith.constant dense<0.000000e+00> : vector<8x8xf32>
    %283 = tpu.matmul %281, %282, %cst_93 {dimension_numbers = #tpu.dot_dimension_numbers<[1], [0], [0], [1], [0, 0, 1, 1], [], []>} : vector<8x16xbf16>, vector<16x8xbf16>, vector<8x8xf32> -> vector<8x8xf32>
    %c0_94 = arith.constant 0 : index
    %c8_95 = arith.constant 8 : index
    %284 = vector.load %arg10[%c0_94, %c8_95] : memref<16x32xf32, #tpu.memory_space<vmem>>, vector<8x8xf32>
    tpu.vector_store %arg10[%c0_94, %c8_95], %283 {strides = array<i32>} : memref<16x32xf32, #tpu.memory_space<vmem>>, vector<8x8xf32>,
    %285 = vector.extract_strided_slice %226 {offsets = [0, 16], sizes = [8, 8], strides = [1, 1]} : vector<16x32xf32> to vector<8x8xf32>
    %286 = vector.extract_strided_slice %233 {offsets = [0, 16], sizes = [16, 8], strides = [1, 1]} : vector<32x32xf32> to vector<16x8xf32>
    %287 = arith.truncf %285 : vector<8x8xf32> to vector<8x8xbf16>
    %288 = arith.truncf %286 : vector<16x8xf32> to vector<16x8xbf16>
    %cst_96 = arith.constant dense<0.000000e+00> : vector<8x16xf32>
    %289 = tpu.matmul %287, %288, %cst_96 {dimension_numbers = #tpu.dot_dimension_numbers<[1], [1], [0], [0], [0, 0, 1, 0], [], []>} : vector<8x8xbf16>, vector<16x8xbf16>, vector<8x16xf32> -> vector<8x16xf32>
    %290 = vector.broadcast %240 : vector<1x16xf32> to vector<8x16xf32>
    %291 = arith.addf %289, %290 : vector<8x16xf32>
    %cst_97 = arith.constant dense<0xFF800000> : vector<8xf32>
    %292 = vector.multi_reduction <maximumf>, %291, %cst_97 [1] : vector<8x16xf32> to vector<8xf32>
    %293 = vector.shape_cast %292 : vector<8xf32> to vector<8x1xf32>
    %294 = vector.broadcast %293 : vector<8x1xf32> to vector<8x16xf32>
    %295 = arith.subf %291, %294 : vector<8x16xf32>
    %296 = math.exp %295 : vector<8x16xf32>
    %cst_98 = arith.constant dense<0.000000e+00> : vector<8xf32>
    %297 = vector.multi_reduction <add>, %296, %cst_98 [1] : vector<8x16xf32> to vector<8xf32>
    %298 = vector.shape_cast %297 : vector<8xf32> to vector<8x1xf32>
    %299 = tpu.reciprocal %298 {approx = true} : vector<8x1xf32> -> vector<8x1xf32>
    %300 = vector.broadcast %299 : vector<8x1xf32> to vector<8x16xf32>
    %301 = arith.mulf %296, %300 : vector<8x16xf32>
    %302 = vector.extract_strided_slice %234 {offsets = [0, 16], sizes = [16, 8], strides = [1, 1]} : vector<32x32xf32> to vector<16x8xf32>
    %303 = arith.truncf %301 : vector<8x16xf32> to vector<8x16xbf16>
    %304 = arith.truncf %302 : vector<16x8xf32> to vector<16x8xbf16>
    %cst_99 = arith.constant dense<0.000000e+00> : vector<8x8xf32>
    %305 = tpu.matmul %303, %304, %cst_99 {dimension_numbers = #tpu.dot_dimension_numbers<[1], [0], [0], [1], [0, 0, 1, 1], [], []>} : vector<8x16xbf16>, vector<16x8xbf16>, vector<8x8xf32> -> vector<8x8xf32>
    %c0_100 = arith.constant 0 : index
    %c16_101 = arith.constant 16 : index
    %306 = vector.load %arg10[%c0_100, %c16_101] : memref<16x32xf32, #tpu.memory_space<vmem>>, vector<8x8xf32>
    tpu.vector_store %arg10[%c0_100, %c16_101], %305 {strides = array<i32>} : memref<16x32xf32, #tpu.memory_space<vmem>>, vector<8x8xf32>,
    %307 = vector.extract_strided_slice %226 {offsets = [0, 24], sizes = [8, 8], strides = [1, 1]} : vector<16x32xf32> to vector<8x8xf32>
    %308 = vector.extract_strided_slice %233 {offsets = [0, 24], sizes = [16, 8], strides = [1, 1]} : vector<32x32xf32> to vector<16x8xf32>
    %309 = arith.truncf %307 : vector<8x8xf32> to vector<8x8xbf16>
    %310 = arith.truncf %308 : vector<16x8xf32> to vector<16x8xbf16>
    %cst_102 = arith.constant dense<0.000000e+00> : vector<8x16xf32>
    %311 = tpu.matmul %309, %310, %cst_102 {dimension_numbers = #tpu.dot_dimension_numbers<[1], [1], [0], [0], [0, 0, 1, 0], [], []>} : vector<8x8xbf16>, vector<16x8xbf16>, vector<8x16xf32> -> vector<8x16xf32>
    %312 = vector.broadcast %240 : vector<1x16xf32> to vector<8x16xf32>
    %313 = arith.addf %311, %312 : vector<8x16xf32>
    %cst_103 = arith.constant dense<0xFF800000> : vector<8xf32>
    %314 = vector.multi_reduction <maximumf>, %313, %cst_103 [1] : vector<8x16xf32> to vector<8xf32>
    %315 = vector.shape_cast %314 : vector<8xf32> to vector<8x1xf32>
    %316 = vector.broadcast %315 : vector<8x1xf32> to vector<8x16xf32>
    %317 = arith.subf %313, %316 : vector<8x16xf32>
    %318 = math.exp %317 : vector<8x16xf32>
    %cst_104 = arith.constant dense<0.000000e+00> : vector<8xf32>
    %319 = vector.multi_reduction <add>, %318, %cst_104 [1] : vector<8x16xf32> to vector<8xf32>
    %320 = vector.shape_cast %319 : vector<8xf32> to vector<8x1xf32>
    %321 = tpu.reciprocal %320 {approx = true} : vector<8x1xf32> -> vector<8x1xf32>
    %322 = vector.broadcast %321 : vector<8x1xf32> to vector<8x16xf32>
    %323 = arith.mulf %318, %322 : vector<8x16xf32>
    %324 = vector.extract_strided_slice %234 {offsets = [0, 24], sizes = [16, 8], strides = [1, 1]} : vector<32x32xf32> to vector<16x8xf32>
    %325 = arith.truncf %323 : vector<8x16xf32> to vector<8x16xbf16>
    %326 = arith.truncf %324 : vector<16x8xf32> to vector<16x8xbf16>
    %cst_105 = arith.constant dense<0.000000e+00> : vector<8x8xf32>
    %327 = tpu.matmul %325, %326, %cst_105 {dimension_numbers = #tpu.dot_dimension_numbers<[1], [0], [0], [1], [0, 0, 1, 1], [], []>} : vector<8x16xbf16>, vector<16x8xbf16>, vector<8x8xf32> -> vector<8x8xf32>
    %c0_106 = arith.constant 0 : index
    %c24_107 = arith.constant 24 : index
    %328 = vector.load %arg10[%c0_106, %c24_107] : memref<16x32xf32, #tpu.memory_space<vmem>>, vector<8x8xf32>
    tpu.vector_store %arg10[%c0_106, %c24_107], %327 {strides = array<i32>} : memref<16x32xf32, #tpu.memory_space<vmem>>, vector<8x8xf32>,
    %c1_108 = arith.constant 1 : index
    %c0_109 = arith.constant 0 : index
    %329 = vector.load %arg2[%c1_108, %c0_109] : memref<2x16xf32, #tpu.memory_space<vmem>>, vector<1x16xf32>
    %cst_110 = arith.constant 5.000000e-01 : f32
    %330 = vector.broadcast %cst_110 : f32 to vector<1x16xf32>
    %331 = arith.cmpf ogt, %329, %330 : vector<1x16xf32>
    %cst_111 = arith.constant 0.000000e+00 : f32
    %cst_112 = arith.constant -1.000000e+09 : f32
    %332 = vector.broadcast %cst_111 : f32 to vector<1x16xf32>
    %333 = vector.broadcast %cst_112 : f32 to vector<1x16xf32>
    %334 = arith.select %331, %332, %333 : vector<1x16xi1>, vector<1x16xf32>
    %335 = vector.extract_strided_slice %226 {offsets = [8, 0], sizes = [8, 8], strides = [1, 1]} : vector<16x32xf32> to vector<8x8xf32>
    %336 = vector.extract_strided_slice %233 {offsets = [16, 0], sizes = [16, 8], strides = [1, 1]} : vector<32x32xf32> to vector<16x8xf32>
    %337 = arith.truncf %335 : vector<8x8xf32> to vector<8x8xbf16>
    %338 = arith.truncf %336 : vector<16x8xf32> to vector<16x8xbf16>
    %cst_113 = arith.constant dense<0.000000e+00> : vector<8x16xf32>
    %339 = tpu.matmul %337, %338, %cst_113 {dimension_numbers = #tpu.dot_dimension_numbers<[1], [1], [0], [0], [0, 0, 1, 0], [], []>} : vector<8x8xbf16>, vector<16x8xbf16>, vector<8x16xf32> -> vector<8x16xf32>
    %340 = vector.broadcast %334 : vector<1x16xf32> to vector<8x16xf32>
    %341 = arith.addf %339, %340 : vector<8x16xf32>
    %cst_114 = arith.constant dense<0xFF800000> : vector<8xf32>
    %342 = vector.multi_reduction <maximumf>, %341, %cst_114 [1] : vector<8x16xf32> to vector<8xf32>
    %343 = vector.shape_cast %342 : vector<8xf32> to vector<8x1xf32>
    %344 = vector.broadcast %343 : vector<8x1xf32> to vector<8x16xf32>
    %345 = arith.subf %341, %344 : vector<8x16xf32>
    %346 = math.exp %345 : vector<8x16xf32>
    %cst_115 = arith.constant dense<0.000000e+00> : vector<8xf32>
    %347 = vector.multi_reduction <add>, %346, %cst_115 [1] : vector<8x16xf32> to vector<8xf32>
    %348 = vector.shape_cast %347 : vector<8xf32> to vector<8x1xf32>
    %349 = tpu.reciprocal %348 {approx = true} : vector<8x1xf32> -> vector<8x1xf32>
    %350 = vector.broadcast %349 : vector<8x1xf32> to vector<8x16xf32>
    %351 = arith.mulf %346, %350 : vector<8x16xf32>
    %352 = vector.extract_strided_slice %234 {offsets = [16, 0], sizes = [16, 8], strides = [1, 1]} : vector<32x32xf32> to vector<16x8xf32>
    %353 = arith.truncf %351 : vector<8x16xf32> to vector<8x16xbf16>
    %354 = arith.truncf %352 : vector<16x8xf32> to vector<16x8xbf16>
    %cst_116 = arith.constant dense<0.000000e+00> : vector<8x8xf32>
    %355 = tpu.matmul %353, %354, %cst_116 {dimension_numbers = #tpu.dot_dimension_numbers<[1], [0], [0], [1], [0, 0, 1, 1], [], []>} : vector<8x16xbf16>, vector<16x8xbf16>, vector<8x8xf32> -> vector<8x8xf32>
    %c8_117 = arith.constant 8 : index
    %c0_118 = arith.constant 0 : index
    %356 = vector.load %arg10[%c8_117, %c0_118] : memref<16x32xf32, #tpu.memory_space<vmem>>, vector<8x8xf32>
    tpu.vector_store %arg10[%c8_117, %c0_118], %355 {strides = array<i32>} : memref<16x32xf32, #tpu.memory_space<vmem>>, vector<8x8xf32>,
    %357 = vector.extract_strided_slice %226 {offsets = [8, 8], sizes = [8, 8], strides = [1, 1]} : vector<16x32xf32> to vector<8x8xf32>
    %358 = vector.extract_strided_slice %233 {offsets = [16, 8], sizes = [16, 8], strides = [1, 1]} : vector<32x32xf32> to vector<16x8xf32>
    %359 = arith.truncf %357 : vector<8x8xf32> to vector<8x8xbf16>
    %360 = arith.truncf %358 : vector<16x8xf32> to vector<16x8xbf16>
    %cst_119 = arith.constant dense<0.000000e+00> : vector<8x16xf32>
    %361 = tpu.matmul %359, %360, %cst_119 {dimension_numbers = #tpu.dot_dimension_numbers<[1], [1], [0], [0], [0, 0, 1, 0], [], []>} : vector<8x8xbf16>, vector<16x8xbf16>, vector<8x16xf32> -> vector<8x16xf32>
    %362 = vector.broadcast %334 : vector<1x16xf32> to vector<8x16xf32>
    %363 = arith.addf %361, %362 : vector<8x16xf32>
    %cst_120 = arith.constant dense<0xFF800000> : vector<8xf32>
    %364 = vector.multi_reduction <maximumf>, %363, %cst_120 [1] : vector<8x16xf32> to vector<8xf32>
    %365 = vector.shape_cast %364 : vector<8xf32> to vector<8x1xf32>
    %366 = vector.broadcast %365 : vector<8x1xf32> to vector<8x16xf32>
    %367 = arith.subf %363, %366 : vector<8x16xf32>
    %368 = math.exp %367 : vector<8x16xf32>
    %cst_121 = arith.constant dense<0.000000e+00> : vector<8xf32>
    %369 = vector.multi_reduction <add>, %368, %cst_121 [1] : vector<8x16xf32> to vector<8xf32>
    %370 = vector.shape_cast %369 : vector<8xf32> to vector<8x1xf32>
    %371 = tpu.reciprocal %370 {approx = true} : vector<8x1xf32> -> vector<8x1xf32>
    %372 = vector.broadcast %371 : vector<8x1xf32> to vector<8x16xf32>
    %373 = arith.mulf %368, %372 : vector<8x16xf32>
    %374 = vector.extract_strided_slice %234 {offsets = [16, 8], sizes = [16, 8], strides = [1, 1]} : vector<32x32xf32> to vector<16x8xf32>
    %375 = arith.truncf %373 : vector<8x16xf32> to vector<8x16xbf16>
    %376 = arith.truncf %374 : vector<16x8xf32> to vector<16x8xbf16>
    %cst_122 = arith.constant dense<0.000000e+00> : vector<8x8xf32>
    %377 = tpu.matmul %375, %376, %cst_122 {dimension_numbers = #tpu.dot_dimension_numbers<[1], [0], [0], [1], [0, 0, 1, 1], [], []>} : vector<8x16xbf16>, vector<16x8xbf16>, vector<8x8xf32> -> vector<8x8xf32>
    %c8_123 = arith.constant 8 : index
    %c8_124 = arith.constant 8 : index
    %378 = vector.load %arg10[%c8_123, %c8_124] : memref<16x32xf32, #tpu.memory_space<vmem>>, vector<8x8xf32>
    tpu.vector_store %arg10[%c8_123, %c8_124], %377 {strides = array<i32>} : memref<16x32xf32, #tpu.memory_space<vmem>>, vector<8x8xf32>,
    %379 = vector.extract_strided_slice %226 {offsets = [8, 16], sizes = [8, 8], strides = [1, 1]} : vector<16x32xf32> to vector<8x8xf32>
    %380 = vector.extract_strided_slice %233 {offsets = [16, 16], sizes = [16, 8], strides = [1, 1]} : vector<32x32xf32> to vector<16x8xf32>
    %381 = arith.truncf %379 : vector<8x8xf32> to vector<8x8xbf16>
    %382 = arith.truncf %380 : vector<16x8xf32> to vector<16x8xbf16>
    %cst_125 = arith.constant dense<0.000000e+00> : vector<8x16xf32>
    %383 = tpu.matmul %381, %382, %cst_125 {dimension_numbers = #tpu.dot_dimension_numbers<[1], [1], [0], [0], [0, 0, 1, 0], [], []>} : vector<8x8xbf16>, vector<16x8xbf16>, vector<8x16xf32> -> vector<8x16xf32>
    %384 = vector.broadcast %334 : vector<1x16xf32> to vector<8x16xf32>
    %385 = arith.addf %383, %384 : vector<8x16xf32>
    %cst_126 = arith.constant dense<0xFF800000> : vector<8xf32>
    %386 = vector.multi_reduction <maximumf>, %385, %cst_126 [1] : vector<8x16xf32> to vector<8xf32>
    %387 = vector.shape_cast %386 : vector<8xf32> to vector<8x1xf32>
    %388 = vector.broadcast %387 : vector<8x1xf32> to vector<8x16xf32>
    %389 = arith.subf %385, %388 : vector<8x16xf32>
    %390 = math.exp %389 : vector<8x16xf32>
    %cst_127 = arith.constant dense<0.000000e+00> : vector<8xf32>
    %391 = vector.multi_reduction <add>, %390, %cst_127 [1] : vector<8x16xf32> to vector<8xf32>
    %392 = vector.shape_cast %391 : vector<8xf32> to vector<8x1xf32>
    %393 = tpu.reciprocal %392 {approx = true} : vector<8x1xf32> -> vector<8x1xf32>
    %394 = vector.broadcast %393 : vector<8x1xf32> to vector<8x16xf32>
    %395 = arith.mulf %390, %394 : vector<8x16xf32>
    %396 = vector.extract_strided_slice %234 {offsets = [16, 16], sizes = [16, 8], strides = [1, 1]} : vector<32x32xf32> to vector<16x8xf32>
    %397 = arith.truncf %395 : vector<8x16xf32> to vector<8x16xbf16>
    %398 = arith.truncf %396 : vector<16x8xf32> to vector<16x8xbf16>
    %cst_128 = arith.constant dense<0.000000e+00> : vector<8x8xf32>
    %399 = tpu.matmul %397, %398, %cst_128 {dimension_numbers = #tpu.dot_dimension_numbers<[1], [0], [0], [1], [0, 0, 1, 1], [], []>} : vector<8x16xbf16>, vector<16x8xbf16>, vector<8x8xf32> -> vector<8x8xf32>
    %c8_129 = arith.constant 8 : index
    %c16_130 = arith.constant 16 : index
    %400 = vector.load %arg10[%c8_129, %c16_130] : memref<16x32xf32, #tpu.memory_space<vmem>>, vector<8x8xf32>
    tpu.vector_store %arg10[%c8_129, %c16_130], %399 {strides = array<i32>} : memref<16x32xf32, #tpu.memory_space<vmem>>, vector<8x8xf32>,
    %401 = vector.extract_strided_slice %226 {offsets = [8, 24], sizes = [8, 8], strides = [1, 1]} : vector<16x32xf32> to vector<8x8xf32>
    %402 = vector.extract_strided_slice %233 {offsets = [16, 24], sizes = [16, 8], strides = [1, 1]} : vector<32x32xf32> to vector<16x8xf32>
    %403 = arith.truncf %401 : vector<8x8xf32> to vector<8x8xbf16>
    %404 = arith.truncf %402 : vector<16x8xf32> to vector<16x8xbf16>
    %cst_131 = arith.constant dense<0.000000e+00> : vector<8x16xf32>
    %405 = tpu.matmul %403, %404, %cst_131 {dimension_numbers = #tpu.dot_dimension_numbers<[1], [1], [0], [0], [0, 0, 1, 0], [], []>} : vector<8x8xbf16>, vector<16x8xbf16>, vector<8x16xf32> -> vector<8x16xf32>
    %406 = vector.broadcast %334 : vector<1x16xf32> to vector<8x16xf32>
    %407 = arith.addf %405, %406 : vector<8x16xf32>
    %cst_132 = arith.constant dense<0xFF800000> : vector<8xf32>
    %408 = vector.multi_reduction <maximumf>, %407, %cst_132 [1] : vector<8x16xf32> to vector<8xf32>
    %409 = vector.shape_cast %408 : vector<8xf32> to vector<8x1xf32>
    %410 = vector.broadcast %409 : vector<8x1xf32> to vector<8x16xf32>
    %411 = arith.subf %407, %410 : vector<8x16xf32>
    %412 = math.exp %411 : vector<8x16xf32>
    %cst_133 = arith.constant dense<0.000000e+00> : vector<8xf32>
    %413 = vector.multi_reduction <add>, %412, %cst_133 [1] : vector<8x16xf32> to vector<8xf32>
    %414 = vector.shape_cast %413 : vector<8xf32> to vector<8x1xf32>
    %415 = tpu.reciprocal %414 {approx = true} : vector<8x1xf32> -> vector<8x1xf32>
    %416 = vector.broadcast %415 : vector<8x1xf32> to vector<8x16xf32>
    %417 = arith.mulf %412, %416 : vector<8x16xf32>
    %418 = vector.extract_strided_slice %234 {offsets = [16, 24], sizes = [16, 8], strides = [1, 1]} : vector<32x32xf32> to vector<16x8xf32>
    %419 = arith.truncf %417 : vector<8x16xf32> to vector<8x16xbf16>
    %420 = arith.truncf %418 : vector<16x8xf32> to vector<16x8xbf16>
    %cst_134 = arith.constant dense<0.000000e+00> : vector<8x8xf32>
    %421 = tpu.matmul %419, %420, %cst_134 {dimension_numbers = #tpu.dot_dimension_numbers<[1], [0], [0], [1], [0, 0, 1, 1], [], []>} : vector<8x16xbf16>, vector<16x8xbf16>, vector<8x8xf32> -> vector<8x8xf32>
    %c8_135 = arith.constant 8 : index
    %c24_136 = arith.constant 24 : index
    %422 = vector.load %arg10[%c8_135, %c24_136] : memref<16x32xf32, #tpu.memory_space<vmem>>, vector<8x8xf32>
    tpu.vector_store %arg10[%c8_135, %c24_136], %421 {strides = array<i32>} : memref<16x32xf32, #tpu.memory_space<vmem>>, vector<8x8xf32>,
    %c0_137 = arith.constant 0 : index
    %c0_138 = arith.constant 0 : index
    %423 = vector.load %arg10[%c0_137, %c0_138] : memref<16x32xf32, #tpu.memory_space<vmem>>, vector<16x32xf32>
    %c2_139 = arith.constant 2 : index
    %c0_140 = arith.constant 0 : index
    %c0_141 = arith.constant 0 : index
    %424 = vector.load %arg5[%c2_139, %c0_140, %c0_141] : memref<3x32x32xbf16, #tpu.memory_space<vmem>>, vector<1x32x32xbf16>
    %425 = vector.shape_cast %424 : vector<1x32x32xbf16> to vector<32x32xbf16>
    %426 = arith.truncf %423 : vector<16x32xf32> to vector<16x32xbf16>
    %cst_142 = arith.constant dense<0.000000e+00> : vector<16x32xf32>
    %427 = tpu.matmul %426, %425, %cst_142 {dimension_numbers = #tpu.dot_dimension_numbers<[1], [0], [0], [1], [0, 0, 1, 1], [], []>} : vector<16x32xbf16>, vector<32x32xbf16>, vector<16x32xf32> -> vector<16x32xf32>
    %c6 = arith.constant 6 : index
    %c0_143 = arith.constant 0 : index
    %428 = vector.load %arg8[%c6, %c0_143] : memref<13x96xf32, #tpu.memory_space<vmem>>, vector<1x32xf32>
    %429 = vector.broadcast %428 : vector<1x32xf32> to vector<16x32xf32>
    %430 = arith.addf %427, %429 : vector<16x32xf32>
    %431 = arith.addf %430, %217 : vector<16x32xf32>
    %c7 = arith.constant 7 : index
    %c0_144 = arith.constant 0 : index
    %432 = vector.load %arg8[%c7, %c0_144] : memref<13x96xf32, #tpu.memory_space<vmem>>, vector<1x32xf32>
    %c8_145 = arith.constant 8 : index
    %c0_146 = arith.constant 0 : index
    %433 = vector.load %arg8[%c8_145, %c0_146] : memref<13x96xf32, #tpu.memory_space<vmem>>, vector<1x32xf32>
    %cst_147 = arith.constant dense<0.000000e+00> : vector<16xf32>
    %434 = vector.multi_reduction <add>, %431, %cst_147 [1] : vector<16x32xf32> to vector<16xf32>
    %435 = vector.shape_cast %434 : vector<16xf32> to vector<16x1xf32>
    %cst_148 = arith.constant 3.200000e+01 : f32
    %436 = vector.broadcast %cst_148 : f32 to vector<16x1xf32>
    %437 = arith.divf %435, %436 : vector<16x1xf32>
    %438 = vector.broadcast %437 : vector<16x1xf32> to vector<16x32xf32>
    %439 = arith.subf %431, %438 : vector<16x32xf32>
    %440 = arith.mulf %439, %439 : vector<16x32xf32>
    %cst_149 = arith.constant dense<0.000000e+00> : vector<16xf32>
    %441 = vector.multi_reduction <add>, %440, %cst_149 [1] : vector<16x32xf32> to vector<16xf32>
    %442 = vector.shape_cast %441 : vector<16xf32> to vector<16x1xf32>
    %cst_150 = arith.constant 3.200000e+01 : f32
    %443 = vector.broadcast %cst_150 : f32 to vector<16x1xf32>
    %444 = arith.divf %442, %443 : vector<16x1xf32>
    %cst_151 = arith.constant 9.99999996E-13 : f32
    %445 = vector.broadcast %cst_151 : f32 to vector<16x1xf32>
    %446 = arith.addf %444, %445 : vector<16x1xf32>
    %447 = math.rsqrt %446 : vector<16x1xf32>
    %448 = vector.broadcast %447 : vector<16x1xf32> to vector<16x32xf32>
    %449 = arith.mulf %439, %448 : vector<16x32xf32>
    %450 = vector.broadcast %432 : vector<1x32xf32> to vector<16x32xf32>
    %451 = arith.mulf %449, %450 : vector<16x32xf32>
    %452 = vector.broadcast %433 : vector<1x32xf32> to vector<16x32xf32>
    %453 = arith.addf %451, %452 : vector<16x32xf32>
    %c0_152 = arith.constant 0 : index
    %c0_153 = arith.constant 0 : index
    %454 = vector.load %arg6[%c0_152, %c0_153] : memref<32x64xbf16, #tpu.memory_space<vmem>>, vector<32x64xbf16>
    %455 = arith.truncf %453 : vector<16x32xf32> to vector<16x32xbf16>
    %cst_154 = arith.constant dense<0.000000e+00> : vector<16x64xf32>
    %456 = tpu.matmul %455, %454, %cst_154 {dimension_numbers = #tpu.dot_dimension_numbers<[1], [0], [0], [1], [0, 0, 1, 1], [], []>} : vector<16x32xbf16>, vector<32x64xbf16>, vector<16x64xf32> -> vector<16x64xf32>
    %c9 = arith.constant 9 : index
    %c0_155 = arith.constant 0 : index
    %457 = vector.load %arg8[%c9, %c0_155] : memref<13x96xf32, #tpu.memory_space<vmem>>, vector<1x64xf32>
    %458 = vector.broadcast %457 : vector<1x64xf32> to vector<16x64xf32>
    %459 = arith.addf %456, %458 : vector<16x64xf32>
    %cst_156 = arith.constant 5.000000e-01 : f32
    %460 = vector.broadcast %cst_156 : f32 to vector<16x64xf32>
    %461 = arith.mulf %460, %459 : vector<16x64xf32>
    %cst_157 = arith.constant 4.471500e-02 : f32
    %462 = vector.broadcast %cst_157 : f32 to vector<16x64xf32>
    %463 = arith.mulf %462, %459 : vector<16x64xf32>
    %464 = arith.mulf %463, %459 : vector<16x64xf32>
    %465 = arith.mulf %464, %459 : vector<16x64xf32>
    %466 = arith.addf %459, %465 : vector<16x64xf32>
    %cst_158 = arith.constant 0.797884583 : f32
    %467 = vector.broadcast %cst_158 : f32 to vector<16x64xf32>
    %468 = arith.mulf %467, %466 : vector<16x64xf32>
    %469 = math.tanh %468 : vector<16x64xf32>
    %cst_159 = arith.constant 1.000000e+00 : f32
    %470 = vector.broadcast %cst_159 : f32 to vector<16x64xf32>
    %471 = arith.addf %470, %469 : vector<16x64xf32>
    %472 = arith.mulf %461, %471 : vector<16x64xf32>
    %c0_160 = arith.constant 0 : index
    %c0_161 = arith.constant 0 : index
    %473 = vector.load %arg7[%c0_160, %c0_161] : memref<64x32xbf16, #tpu.memory_space<vmem>>, vector<64x32xbf16>
    %474 = arith.truncf %472 : vector<16x64xf32> to vector<16x64xbf16>
    %cst_162 = arith.constant dense<0.000000e+00> : vector<16x32xf32>
    %475 = tpu.matmul %474, %473, %cst_162 {dimension_numbers = #tpu.dot_dimension_numbers<[1], [0], [0], [1], [0, 0, 1, 1], [], []>} : vector<16x64xbf16>, vector<64x32xbf16>, vector<16x32xf32> -> vector<16x32xf32>
    %c10 = arith.constant 10 : index
    %c0_163 = arith.constant 0 : index
    %476 = vector.load %arg8[%c10, %c0_163] : memref<13x96xf32, #tpu.memory_space<vmem>>, vector<1x32xf32>
    %477 = vector.broadcast %476 : vector<1x32xf32> to vector<16x32xf32>
    %478 = arith.addf %475, %477 : vector<16x32xf32>
    %479 = arith.addf %478, %453 : vector<16x32xf32>
    %c11 = arith.constant 11 : index
    %c0_164 = arith.constant 0 : index
    %480 = vector.load %arg8[%c11, %c0_164] : memref<13x96xf32, #tpu.memory_space<vmem>>, vector<1x32xf32>
    %c12 = arith.constant 12 : index
    %c0_165 = arith.constant 0 : index
    %481 = vector.load %arg8[%c12, %c0_165] : memref<13x96xf32, #tpu.memory_space<vmem>>, vector<1x32xf32>
    %cst_166 = arith.constant dense<0.000000e+00> : vector<16xf32>
    %482 = vector.multi_reduction <add>, %479, %cst_166 [1] : vector<16x32xf32> to vector<16xf32>
    %483 = vector.shape_cast %482 : vector<16xf32> to vector<16x1xf32>
    %cst_167 = arith.constant 3.200000e+01 : f32
    %484 = vector.broadcast %cst_167 : f32 to vector<16x1xf32>
    %485 = arith.divf %483, %484 : vector<16x1xf32>
    %486 = vector.broadcast %485 : vector<16x1xf32> to vector<16x32xf32>
    %487 = arith.subf %479, %486 : vector<16x32xf32>
    %488 = arith.mulf %487, %487 : vector<16x32xf32>
    %cst_168 = arith.constant dense<0.000000e+00> : vector<16xf32>
    %489 = vector.multi_reduction <add>, %488, %cst_168 [1] : vector<16x32xf32> to vector<16xf32>
    %490 = vector.shape_cast %489 : vector<16xf32> to vector<16x1xf32>
    %cst_169 = arith.constant 3.200000e+01 : f32
    %491 = vector.broadcast %cst_169 : f32 to vector<16x1xf32>
    %492 = arith.divf %490, %491 : vector<16x1xf32>
    %cst_170 = arith.constant 9.99999996E-13 : f32
    %493 = vector.broadcast %cst_170 : f32 to vector<16x1xf32>
    %494 = arith.addf %492, %493 : vector<16x1xf32>
    %495 = math.rsqrt %494 : vector<16x1xf32>
    %496 = vector.broadcast %495 : vector<16x1xf32> to vector<16x32xf32>
    %497 = arith.mulf %487, %496 : vector<16x32xf32>
    %498 = vector.broadcast %480 : vector<1x32xf32> to vector<16x32xf32>
    %499 = arith.mulf %497, %498 : vector<16x32xf32>
    %500 = vector.broadcast %481 : vector<1x32xf32> to vector<16x32xf32>
    %501 = arith.addf %499, %500 : vector<16x32xf32>
    %c0_171 = arith.constant 0 : index
    %c0_172 = arith.constant 0 : index
    %502 = vector.load %arg9[%c0_171, %c0_172] : memref<16x32xf32, #tpu.memory_space<vmem>>, vector<16x32xf32>
    tpu.vector_store %arg9[%c0_171, %c0_172], %501 {strides = array<i32>} : memref<16x32xf32, #tpu.memory_space<vmem>>, vector<16x32xf32>,
    return
  }
}

</mosaic_0001>

<bundles_post_ra>
// kernel: tpu_custom_call.1
= control target key start
LH: loop header
LB: loop body
LE: loop exit
PB: predicated region body
PF: predicated region fallthrough
CT: control target
= control target key end

     0   :  { %14 = vsyncpa [#allocation4], 0  ;;  %s3997_s0 = inlined_call_operand.hbm [shape: f32[16,32], index: 0, kind: input, shape index: {}]   ;;  %s3998_s1 = inlined_call_operand.hbm [shape: f32[32,32], index: 1, kind: input, shape index: {}]   ;;  %s3999_s2 = inlined_call_operand.vmem [shape: f32[2,16], index: 2, kind: input, shape index: {}]   ;;  %s4000_s3 = inlined_call_operand.hbm [shape: bf16[32,96], index: 3, kind: input, shape index: {}]   ;;  %s4001_s4 = inlined_call_operand.hbm [shape: bf16[32,64], index: 4, kind: input, shape index: {}]   ;;  %s4002_s5 = inlined_call_operand.vmem [shape: bf16[3,32,32], index: 5, kind: input, shape index: {}]   ;;  %s4003_s6 = inlined_call_operand.hbm [shape: bf16[32,64], index: 6, kind: input, shape index: {}]   ;;  %s4004_s7 = inlined_call_operand.vmem [shape: bf16[64,32], index: 7, kind: input, shape index: {}]   ;;  %s4005_s8 = inlined_call_operand.hbm [shape: f32[13,96], index: 8, kind: input, shape index: {}]   ;;  %s4006_s9 = inlined_call_operand.hbm [shape: f32[16,32], index: 9, kind: output, shape index: {}]  }
   0x1   :  { %15 = vsyncpa [#allocation7], 0 }
   0x2   :  { %16 = vsyncpa [#allocation10], 0 }
   0x3   :  { %17 = vsyncpa [#allocation13], 0 }
   0x4   :  { %18 = vsyncpa [#allocation5], 0  ;;  %s3332_s30 = smov [#allocation6]   ;;  %s3168_s13 = scalar_lea.hbm %s3998_s1, 512 }
   0x5   :  { %s36_s10 = sshll.u32 %s3332_s30, 4  ;;  %p3169_p0 = scmp.ne.s32.totalorder %s3998_s1, %s3168_s13  ;;  %s37_s10 = int_to_ptr.vmem [resolvable:$true] %s36_s10 }
   0x6   :  { %p3172_p1 = scmp.lt.u32.totalorder %s3168_s13, %s3998_s1 }
   0x8   :  { %p3174_p2 = pnand %p3172_p1, %p3169_p0 }
   0xa   :  { %3177 = shalt.err (!%p3174_p2)
}
   0xb   :  { %s3178_s18 = scalar_lea.vmem %s37_s10, 512  ;;  %p3183_p4 = scmp.lt.s32.totalorder %s37_s10, %s37_s10 }
   0xc   :  { %p3179_p3 = scmp.ne.s32.totalorder %s37_s10, %s3178_s18  ;;  %p3184_p5 = scmp.lt.s32.totalorder %s3178_s18, %s3178_s18 }
   0xe   :  { %p3185_p6 = por %p3184_p5, %p3183_p4 }
  0x10   :  { %p3186_p7 = pnand %p3185_p6, %p3179_p3 }
  0x12   :  { %3189 = shalt.err (!%p3186_p7)
}
  0x13   :  { %s3333_s19 = smov 128   ;;  %s3334_s20 = smov 8  }
  0x14   :  { %42 = dma.hbm_to_vmem [thread:$0]  %s3998_s1, 512, %s37_s10, [#allocation7], %s3333_s19, %s3333_s19, %s3334_s20  }
  0x15   :  { %s3335_s23 = smov [#allocation9]   ;;  %s3336_s25 = smov [#allocation3]  }
  0x16   :  { %s62_s24 = sshll.u32 %s3335_s23, 4  ;;  %s24_s26 = sshll.u32 %s3336_s25, 4  ;;  %s63_s24 = int_to_ptr.vmem [resolvable:$true] %s62_s24  ;;  %s25_s26 = int_to_ptr.vmem [resolvable:$true] %s24_s26 }
  0x17   :  { %s3190_s29 = scalar_lea.hbm %s4001_s4, 256 }
  0x18   :  { %p3191_p8 = scmp.ne.s32.totalorder %s4001_s4, %s3190_s29  ;;  %p3194_p9 = scmp.lt.u32.totalorder %s3190_s29, %s4001_s4 }
  0x1a   :  { %p3196_p10 = pnand %p3194_p9, %p3191_p8 }
  0x1c   :  { %3199 = shalt.err (!%p3196_p10)
}
  0x1d   :  { %s3200_s1 = scalar_lea.vmem %s63_s24, 256  ;;  %p3205_p12 = scmp.lt.s32.totalorder %s63_s24, %s63_s24 }
  0x1e   :  { %p3201_p11 = scmp.ne.s32.totalorder %s63_s24, %s3200_s1  ;;  %p3206_p13 = scmp.lt.s32.totalorder %s3200_s1, %s3200_s1 }
  0x20   :  { %p3207_p0 = por %p3206_p13, %p3205_p12 }
  0x22   :  { %p3208_p1 = pnand %p3207_p0, %p3201_p11 }
  0x24   :  { %3211 = shalt.err (!%p3208_p1)
}
  0x25   :  { %s3337_s10 = smov 64   ;;  %s3338_s14 = smov 4  }
  0x26   :  { %68 = dma.hbm_to_vmem [thread:$0]  %s4001_s4, 256, %s63_s24, [#allocation10], %s3337_s10, %s3337_s10, %s3338_s14  }
  0x27   :  { %s3212_s21 = scalar_lea.hbm %s3997_s0, 256 }
  0x28   :  { %p3213_p2 = scmp.ne.s32.totalorder %s3997_s0, %s3212_s21  ;;  %p3216_p3 = scmp.lt.u32.totalorder %s3212_s21, %s3997_s0 }
  0x2a   :  { %p3218_p4 = pnand %p3216_p3, %p3213_p2 }
  0x2c   :  { %3221 = shalt.err (!%p3218_p4)
}
  0x2d   :  { %s3222_s28 = scalar_lea.vmem %s25_s26, 256  ;;  %p3227_p6 = scmp.lt.s32.totalorder %s25_s26, %s25_s26 }
  0x2e   :  { %p3223_p5 = scmp.ne.s32.totalorder %s25_s26, %s3222_s28  ;;  %p3228_p7 = scmp.lt.s32.totalorder %s3222_s28, %s3222_s28 }
  0x30   :  { %p3229_p8 = por %p3228_p7, %p3227_p6 }
  0x32   :  { %p3230_p9 = pnand %p3229_p8, %p3223_p5 }
  0x34   :  { %3233 = shalt.err (!%p3230_p9)
}
  0x35   :  { %30 = dma.hbm_to_vmem [thread:$0]  %s3997_s0, 256, %s25_s26, [#allocation4], %s3333_s19, %s3333_s19, %s3334_s20  }
  0x36   :  { %s3339_s29 = smov [#allocation8]   ;;  %s3340_s11 = smov [#allocation11]  }
  0x37   :  { %s50_s30 = sshll.u32 %s3339_s29, 4  ;;  %s76_s12 = sshll.u32 %s3340_s11, 4  ;;  %s51_s30 = int_to_ptr.vmem [resolvable:$true] %s50_s30  ;;  %s77_s12 = int_to_ptr.vmem [resolvable:$true] %s76_s12 }
  0x38   :  { %s3234_s15 = scalar_lea.hbm %s4000_s3, 256 }
  0x39   :  { %p3235_p10 = scmp.ne.s32.totalorder %s4000_s3, %s3234_s15  ;;  %p3238_p11 = scmp.lt.u32.totalorder %s3234_s15, %s4000_s3 }
  0x3b   :  { %p3240_p12 = pnand %p3238_p11, %p3235_p10 }
  0x3d   :  { %3243 = shalt.err (!%p3240_p12)
}
  0x3e   :  { %s3244_s0 = scalar_lea.vmem %s51_s30, 256  ;;  %p3249_p0 = scmp.lt.s32.totalorder %s51_s30, %s51_s30 }
  0x3f   :  { %p3245_p13 = scmp.ne.s32.totalorder %s51_s30, %s3244_s0  ;;  %p3250_p1 = scmp.lt.s32.totalorder %s3244_s0, %s3244_s0 }
  0x41   :  { %p3251_p2 = por %p3250_p1, %p3249_p0 }
  0x43   :  { %p3252_p3 = pnand %p3251_p2, %p3245_p13 }
  0x45   :  { %3255 = shalt.err (!%p3252_p3)
}
  0x46   :  { %56 = dma.hbm_to_vmem [thread:$0]  %s4000_s3, 256, %s51_s30, [#allocation7], %s3337_s10, %s3337_s10, %s3338_s14  }
  0x47   :  { %s3256_s27 = scalar_lea.hbm %s4003_s6, 256 }
  0x48   :  { %p3257_p4 = scmp.ne.s32.totalorder %s4003_s6, %s3256_s27  ;;  %p3260_p5 = scmp.lt.u32.totalorder %s3256_s27, %s4003_s6 }
  0x4a   :  { %p3262_p6 = pnand %p3260_p5, %p3257_p4 }
  0x4c   :  { %3265 = shalt.err (!%p3262_p6)
}
  0x4d   :  { %s3266_s11 = scalar_lea.vmem %s77_s12, 256  ;;  %p3271_p8 = scmp.lt.s32.totalorder %s77_s12, %s77_s12 }
  0x4e   :  { %p3267_p7 = scmp.ne.s32.totalorder %s77_s12, %s3266_s11  ;;  %p3272_p9 = scmp.lt.s32.totalorder %s3266_s11, %s3266_s11 }
  0x50   :  { %p3273_p10 = por %p3272_p9, %p3271_p8 }
  0x52   :  { %p3274_p11 = pnand %p3273_p10, %p3267_p7 }
  0x54   :  { %3277 = shalt.err (!%p3274_p11)
}
  0x55   :  { %82 = dma.hbm_to_vmem [thread:$0]  %s4003_s6, 256, %s77_s12, [#allocation10], %s3337_s10, %s3337_s10, %s3338_s14  }
  0x56   :  { %s3341_s13 = smov [#allocation12]   ;;  %s3278_s17 = scalar_lea.hbm %s4005_s8, 256 }
  0x57   :  { %s90_s1 = sshll.u32 %s3341_s13, 4  ;;  %p3279_p12 = scmp.ne.s32.totalorder %s4005_s8, %s3278_s17  ;;  %s91_s1 = int_to_ptr.vmem [resolvable:$true] %s90_s1 }
  0x58   :  { %p3282_p13 = scmp.lt.u32.totalorder %s3278_s17, %s4005_s8 }
  0x5a   :  { %p3284_p0 = pnand %p3282_p13, %p3279_p12 }
  0x5c   :  { %3287 = shalt.err (!%p3284_p0)
}
  0x5d   :  { %s3288_s22 = scalar_lea.vmem %s91_s1, 256  ;;  %p3293_p2 = scmp.lt.s32.totalorder %s91_s1, %s91_s1 }
  0x5e   :  { %p3289_p1 = scmp.ne.s32.totalorder %s91_s1, %s3288_s22  ;;  %p3294_p3 = scmp.lt.s32.totalorder %s3288_s22, %s3288_s22 }
  0x60   :  { %p3295_p4 = por %p3294_p3, %p3293_p2 }
  0x62   :  { %p3296_p5 = pnand %p3295_p4, %p3289_p1 }
  0x64   :  { %3299 = shalt.err (!%p3296_p5)
}
  0x65   :  { %96 = dma.hbm_to_vmem [thread:$0]  %s4005_s8, 256, %s91_s1, [#allocation13], %s3333_s19, %s3333_s19, %s3334_s20  }
  0x66   :  { %3322 = dma.done.wait [#allocation4], 256  }
  0x67   :  { %3323 = vsyncadd [#allocation4], 4294967040 }
  0x68   :  { %3324 = dma.done.wait [#allocation7], 768  }
  0x69   :  { %3325 = vsyncadd [#allocation7], 4294966528 }
  0x6a   :  { %3326 = dma.done.wait [#allocation10], 512  }
  0x6b   :  { %3327 = vsyncadd [#allocation10], 4294966784 }
  0x6c   :  { %3328 = dma.done.wait [#allocation13], 256  }
  0x6d   :  { %3329 = vsyncadd [#allocation13], 4294967040  ;;  %v3342_v0 = vmov 0.0   ;;  %vm3343_vm0 = vmmov 0   ;;  %v3072_v1 = vld [vmem:[#allocation8] sm:$0xff]   ;;  %v3073_v2 = vld [vmem:[#allocation8 + $0x8] sm:$0xff]   ;;  %v122_v41 = vlaneseq }
  0x6e   :  { %2794 = vmatprep.subr.bf16.mxu1 %v3342_v0  ;;  %2798 = vmatprep.mubr.msk.bf16.mxu1 %vm3343_vm0, %v3342_v0  ;;  %v3504_v3 = vld [vmem:[#allocation3] sm:$0xff]  ;;  %v3506_v4 = vld [vmem:[#allocation3 + $0x8] sm:$0xff]  ;;  %vm150_vm1 = vcmask 261120   ;;  %s3344_s8 = smov 96   ;;  %s3345_s12 = smov 120   ;;  %vm202_vm2 = vcmask 64512  }
  0x6f   :  { %2808 = vmatprep.subr.bf16.mxu0 %v3342_v0  ;;  %2810 = vmatprep.mubr.msk.bf16.mxu0 %vm3343_vm0, %v3342_v0  ;;  %v132_v5 = vpack.c.bf16 %v3506_v4, %v3504_v3  ;;  %v2629_v6 = vld [vmem:[#allocation12] ss:$0 sm:$0xff]  ;;  %s3346_s23 = smov 88   ;;  %s3347_s25 = smov 80   ;;  %v3581_v42 = vshrl.u32 %v122_v41, 7  ;;  %v125_v43 = vand.u32 127, %v122_v41 }
  0x70   :  { %2795 = vmatpush3.bf16.msra.mxu1 %v3072_v1  ;;  %s3348_s27 = smov 112   ;;  %s3349_s28 = smov 72   ;;  %v3351_v44 = vmov -1e+09   ;;  %vm266_vm4 = vcmask 1043456   ;;  %vm426_vm5 = vcmask 130112  }
  0x71   :  { %2796 = vmatprep.subr.bf16.mxu1 %v3342_v0  ;;  %s3350_s4 = smov 104   ;;  %vm126_vm3 = vcmp.ge.s32.totalorder %v3581_v42, %v125_v43  ;;  %s3352_s24 = smov 56   ;;  %vm542_vm6 = vcmask 195712   ;;  %vm658_vm7 = vcmask 261312   ;;  %vm1431_vm9 = vcmask 130048  }
  0x72   :  { %v127_v45 = vsel %vm126_vm3, 0.0, %v3351_v44  ;;  %s3353_s29 = smov 48   ;;  %s3354_s11 = smov 40   ;;  %vm2520_vm11 = vcmask 523264  }
  0x73   :  { %s3356_s3 = smov 24  }
  0x74   :  { %2797 = vmatpush3.bf16.msra.mxu1 %v3073_v2 }
  0x75   :  { %2802 = vmatprep.subr.bf16.mxu1 %v3342_v0 }
  0x77   :  { %2799 = vmatmul.mubr.msk.bf16.vlgmr.msra.gmra.mrb[0].mxu1 %vm150_vm1, %v132_v5 }
  0x78   :  { %2804 = vmatprep.mubr.msk.bf16.mxu1 %vm3343_vm0, %v3342_v0 }
 0x14a   :  { %v188_v7 = vpop.f32.mrb[0].mxu1 }
 0x14b   :  { %v189_v8 = vadd.f32 %v2629_v6, %v188_v7  ;;  %v2800_v9 = vpop.f32.mrb[1].mxu1 }
 0x14c   :  { %v191_v10 = vpop.f32.mrb[2].mxu1 }
 0x14d   :  { %v195_v11 = vmul.f32 0.35355338, %v189_v8  ;;  %v3515_v12 = vpack.c.bf16 %v189_v8, %v189_v8  ;;  %v2801_v13 = vpop.f32.mrb[3].mxu1  ;;  %v192_v15 = vadd.f32 %v2629_v6, %v191_v10 }
 0x14f   :  { %v197_v14 = vpack.c.bf16 %v195_v11, %v195_v11  ;;  %200 = vrot.lane.b32.xlu0 %v3515_v12, %s3344_s8  ;;  %v196_v16 = vmul.f32 0.35355338, %v192_v15  ;;  %v3527_v17 = vpack.c.bf16 %v192_v15, %v192_v15 }
 0x151   :  { %312 = vrot.lane.b32.xlu1 %v197_v14, %s3345_s12  ;;  %v660_v18 = vpack.c.bf16 %v196_v16, %v196_v16 }
 0x153   :  { %314 = vrot.lane.b32.xlu0 %v3515_v12, %s3346_s23 }
 0x155   :  { %430 = vrot.lane.b32.xlu1 %v3515_v12, %s3347_s25 }
 0x157   :  { %428 = vrot.lane.b32.xlu0 %v197_v14, %s3348_s27 }
 0x159   :  { %546 = vrot.lane.b32.xlu1 %v3515_v12, %s3349_s28 }
 0x15b   :  { %544 = vrot.lane.b32.xlu0 %v197_v14, %s3350_s4 }
 0x15d   :  { %663 = vrot.lane.b32.xlu1 %v3527_v17, %s3344_s8 }
 0x15f   :  { %775 = vrot.lane.b32.xlu0 %v3527_v17, %s3346_s23 }
 0x161   :  { %773 = vrot.lane.b32.xlu1 %v660_v18, %s3345_s12 }
 0x163   :  { %890 = vrot.lane.b32.xlu0 %v3527_v17, %s3347_s25 }
 0x165   :  { %888 = vrot.lane.b32.xlu1 %v660_v18, %s3348_s27 }
 0x167   :  { %1005 = vrot.lane.b32.xlu0 %v3527_v17, %s3349_s28 }
 0x169   :  { %1003 = vrot.lane.b32.xlu1 %v660_v18, %s3350_s4 }
 0x1c1   :  { %v201_v19 = vpop.permute.xlu0 %200 }
 0x1c2   :  { %v207_v20 = vsel %vm202_vm2, %v201_v19, 0 }
 0x1c3   :  { %2803 = vmatpush3.bf16.xpose.msra.mxu1 %v207_v20  ;;  %v313_v22 = vpop.permute.xlu1 %312 }
 0x1c4   :  { %2814 = vmatprep.subr.bf16.mxu1 %v3342_v0 }
 0x1c5   :  { %v315_v21 = vpop.permute.xlu0 %314 }
 0x1c6   :  { %v320_v23 = vsel %vm202_vm2, %v315_v21, 0 }
 0x1c7   :  { %v431_v24 = vpop.permute.xlu1 %430 }
 0x1c8   :  { %v436_v25 = vsel %vm202_vm2, %v431_v24, 0 }
 0x1c9   :  { %v429_v27 = vpop.permute.xlu0 %428 }
 0x1ca   :  { %2805 = vmatmul.mubr.msk.bf16.vlgmr.msra.gmra.mrb[4].mxu1 %vm202_vm2, %v197_v14 }
 0x1cb   :  { %2815 = vmatpush3.bf16.xpose.msra.mxu1 %v320_v23  ;;  %2816 = vmatprep.mubr.msk.bf16.mxu1 %vm3343_vm0, %v3342_v0  ;;  %v547_v26 = vpop.permute.xlu1 %546 }
 0x1cc   :  { %2826 = vmatprep.subr.bf16.mxu1 %v3342_v0  ;;  %v552_v28 = vsel %vm202_vm2, %v547_v26, 0 }
 0x1cd   :  { %v545_v30 = vpop.permute.xlu0 %544 }
 0x1cf   :  { %v664_v29 = vpop.permute.xlu1 %663 }
 0x1d0   :  { %v669_v31 = vsel %vm202_vm2, %v664_v29, 0 }
 0x1d1   :  { %v776_v32 = vpop.permute.xlu0 %775 }
 0x1d2   :  { %2817 = vmatmul.mubr.msk.bf16.vlgmr.msra.gmra.mrb[8].mxu1 %vm202_vm2, %v313_v22  ;;  %v781_v33 = vsel %vm202_vm2, %v776_v32, 0 }
 0x1d3   :  { %2827 = vmatpush3.bf16.xpose.msra.mxu1 %v436_v25  ;;  %2828 = vmatprep.mubr.msk.bf16.mxu1 %vm3343_vm0, %v3342_v0  ;;  %v774_v35 = vpop.permute.xlu1 %773 }
 0x1d4   :  { %2838 = vmatprep.subr.bf16.mxu1 %v3342_v0 }
 0x1d5   :  { %v891_v34 = vpop.permute.xlu0 %890 }
 0x1d6   :  { %v896_v36 = vsel %vm202_vm2, %v891_v34, 0 }
 0x1d7   :  { %v889_v38 = vpop.permute.xlu1 %888 }
 0x1d9   :  { %v1006_v37 = vpop.permute.xlu0 %1005 }
 0x1da   :  { %2829 = vmatmul.mubr.msk.bf16.vlgmr.msra.gmra.mrb[12].mxu1 %vm202_vm2, %v429_v27  ;;  %v1011_v39 = vsel %vm202_vm2, %v1006_v37, 0 }
 0x1db   :  { %2839 = vmatpush3.bf16.xpose.msra.mxu1 %v552_v28  ;;  %2840 = vmatprep.mubr.msk.bf16.mxu1 %vm3343_vm0, %v3342_v0  ;;  %v1004_v40 = vpop.permute.xlu1 %1003 }
 0x1dc   :  { %2850 = vmatprep.subr.bf16.mxu1 %v3342_v0 }
 0x1e2   :  { %2841 = vmatmul.mubr.msk.bf16.vlgmr.msra.gmra.mrb[16].mxu1 %vm202_vm2, %v545_v30 }
 0x1e3   :  { %2851 = vmatpush3.bf16.xpose.msra.mxu1 %v669_v31  ;;  %2852 = vmatprep.mubr.msk.bf16.mxu1 %vm3343_vm0, %v3342_v0 }
 0x1e4   :  { %2862 = vmatprep.subr.bf16.mxu1 %v3342_v0 }
 0x1ea   :  { %2853 = vmatmul.mubr.msk.bf16.vlgmr.msra.gmra.mrb[20].mxu1 %vm202_vm2, %v660_v18 }
 0x1eb   :  { %2863 = vmatpush3.bf16.xpose.msra.mxu1 %v781_v33  ;;  %2864 = vmatprep.mubr.msk.bf16.mxu1 %vm3343_vm0, %v3342_v0 }
 0x1ec   :  { %2874 = vmatprep.subr.bf16.mxu1 %v3342_v0 }
 0x1f2   :  { %2865 = vmatmul.mubr.msk.bf16.vlgmr.msra.gmra.mrb[24].mxu1 %vm202_vm2, %v774_v35 }
 0x1f3   :  { %2875 = vmatpush3.bf16.xpose.msra.mxu1 %v896_v36  ;;  %2876 = vmatprep.mubr.msk.bf16.mxu1 %vm3343_vm0, %v3342_v0 }
 0x1f4   :  { %2886 = vmatprep.subr.bf16.mxu1 %v3342_v0 }
 0x1fa   :  { %2877 = vmatmul.mubr.msk.bf16.vlgmr.msra.gmra.mrb[28].mxu1 %vm202_vm2, %v889_v38 }
 0x1fb   :  { %2887 = vmatpush3.bf16.xpose.msra.mxu1 %v1011_v39  ;;  %2888 = vmatprep.mubr.msk.bf16.mxu1 %vm3343_vm0, %v3342_v0 }
 0x1fc   :  { %2898 = vmatprep.subr.bf16.mxu1 %v3342_v0 }
 0x202   :  { %2889 = vmatmul.mubr.msk.bf16.vlgmr.msra.gmra.mrb[32].mxu1 %vm202_vm2, %v1004_v40 }
 0x203   :  { %2902 = vmatprep.mubr.msk.bf16.mxu1 %vm3343_vm0, %v3342_v0 }
 0x29d   :  { %v243_v46 = vpop.f32.mrb[4].mxu1 }
 0x29e   :  { %v244_v47 = vadd.f32 %v243_v46, %v127_v45  ;;  %v2806_v48 = vpop.f32.mrb[5].mxu1 }
 0x29f   :  { %v246_v49 = vpop.f32.mrb[6].mxu1 }
 0x2a0   :  { %v2807_v50 = vpop.f32.mrb[7].mxu1  ;;  %v249_v51 = vsel %vm202_vm2, %v244_v47, -inf }
 0x2a1   :  { %250 = vmax.xlane.f32.xlu0 %v249_v51 }
 0x2a5   :  { %v356_v52 = vpop.f32.mrb[8].mxu1 }
 0x2a6   :  { %v357_v53 = vadd.f32 %v356_v52, %v127_v45  ;;  %v2818_v54 = vpop.f32.mrb[9].mxu1 }
 0x2a7   :  { %v359_v55 = vpop.f32.mrb[10].mxu1 }
 0x2a8   :  { %v2819_v56 = vpop.f32.mrb[11].mxu1  ;;  %v362_v57 = vsel %vm202_vm2, %v357_v53, -inf }
 0x2a9   :  { %363 = vmax.xlane.f32.xlu1 %v362_v57 }
 0x2ad   :  { %v472_v58 = vpop.f32.mrb[12].mxu1 }
 0x2ae   :  { %v473_v59 = vadd.f32 %v472_v58, %v127_v45  ;;  %v2830_v60 = vpop.f32.mrb[13].mxu1 }
 0x2af   :  { %v475_v61 = vpop.f32.mrb[14].mxu1 }
 0x2b0   :  { %v2831_v62 = vpop.f32.mrb[15].mxu1  ;;  %v478_v63 = vsel %vm202_vm2, %v473_v59, -inf }
 0x2b1   :  { %479 = vmax.xlane.f32.xlu0 %v478_v63 }
 0x2b5   :  { %v588_v1 = vpop.f32.mrb[16].mxu1 }
 0x2b6   :  { %v3588_v2 = vadd.f32 %v588_v1, %v127_v45  ;;  %v2842_v5 = vpop.f32.mrb[17].mxu1 }
 0x2b7   :  { %v591_v6 = vpop.f32.mrb[18].mxu1 }
 0x2b8   :  { %v2843_v7 = vpop.f32.mrb[19].mxu1  ;;  %v594_v8 = vsel %vm202_vm2, %v3588_v2, -inf }
 0x2b9   :  { %595 = vmax.xlane.f32.xlu0 %v594_v8 }
 0x2bd   :  { %v705_v9 = vpop.f32.mrb[20].mxu1 }
 0x2be   :  { %v3592_v10 = vadd.f32 %v705_v9, %v127_v45  ;;  %v2854_v11 = vpop.f32.mrb[21].mxu1 }
 0x2bf   :  { %v708_v13 = vpop.f32.mrb[22].mxu1 }
 0x2c0   :  { %v2855_v14 = vpop.f32.mrb[23].mxu1  ;;  %v711_v15 = vsel %vm202_vm2, %v3592_v10, -inf }
 0x2c1   :  { %712 = vmax.xlane.f32.xlu1 %v711_v15 }
 0x2c5   :  { %v817_v16 = vpop.f32.mrb[24].mxu1 }
 0x2c6   :  { %v3596_v18 = vadd.f32 %v817_v16, %v127_v45  ;;  %v2866_v19 = vpop.f32.mrb[25].mxu1 }
 0x2c7   :  { %v820_v20 = vpop.f32.mrb[26].mxu1 }
 0x2c8   :  { %v2867_v21 = vpop.f32.mrb[27].mxu1  ;;  %v823_v22 = vsel %vm202_vm2, %v3596_v18, -inf }
 0x2c9   :  { %824 = vmax.xlane.f32.xlu0 %v823_v22 }
 0x2cd   :  { %v932_v23 = vpop.f32.mrb[28].mxu1 }
 0x2ce   :  { %v933_v24 = vadd.f32 %v932_v23, %v127_v45  ;;  %v2878_v25 = vpop.f32.mrb[29].mxu1 }
 0x2cf   :  { %v935_v26 = vpop.f32.mrb[30].mxu1 }
 0x2d0   :  { %v2879_v27 = vpop.f32.mrb[31].mxu1  ;;  %v938_v28 = vsel %vm202_vm2, %v933_v24, -inf }
 0x2d1   :  { %939 = vmax.xlane.f32.xlu1 %v938_v28 }
 0x2d5   :  { %v1047_v29 = vpop.f32.mrb[32].mxu1 }
 0x2d6   :  { %v3601_v30 = vadd.f32 %v1047_v29, %v127_v45  ;;  %v2890_v31 = vpop.f32.mrb[33].mxu1 }
 0x2d7   :  { %v1050_v32 = vpop.f32.mrb[34].mxu1 }
 0x2d8   :  { %v2891_v33 = vpop.f32.mrb[35].mxu1  ;;  %v1053_v34 = vsel %vm202_vm2, %v3601_v30, -inf }
 0x2df   :  { %374 = vrot.lane.b32.xlu0 %v3515_v12, %s3352_s24 }
 0x2e2   :  { %261 = vrot.lane.b32.xlu1 %v3515_v12, %s3337_s10 }
 0x2fe   :  { %1054 = vmax.xlane.f32.xlu0 %v1053_v34 }
 0x32e   :  { %v251_v35 = vpop.xlane.xlu0 %250 }
 0x32f   :  { %v252_v36 = vsub.f32 %v244_v47, %v251_v35 }
 0x331   :  { %v253_v37 = vmul.f32 1.442695, %v252_v36 }
 0x333   :  { %3088 = vpow2.f32 %v253_v37 }
 0x336   :  { %v364_v38 = vpop.xlane.xlu1 %363 }
 0x337   :  { %v365_v39 = vsub.f32 %v357_v53, %v364_v38 }
 0x339   :  { %v366_v40 = vmul.f32 1.442695, %v365_v39 }
 0x33b   :  { %3090 = vpow2.f32 %v366_v40 }
 0x33d   :  { %v3609_v41 = vpop.eup %3088 }
 0x33e   :  { %v480_v43 = vpop.xlane.xlu0 %479  ;;  %v255_v45 = vsel %vm202_vm2, %v3609_v41, 0.0 }
 0x33f   :  { %v481_v46 = vsub.f32 %v473_v59, %v480_v43  ;;  %256 = vadd.xlane.f32.xlu1 %v255_v45 }
 0x341   :  { %v482_v48 = vmul.f32 1.442695, %v481_v46 }
 0x343   :  { %3092 = vpow2.f32 %v482_v48 }
 0x345   :  { %v3613_v49 = vpop.eup %3090 }
 0x346   :  { %v368_v47 = vsel %vm202_vm2, %v3613_v49, 0.0  ;;  %v596_v55 = vpop.xlane.xlu0 %595 }
 0x347   :  { %369 = vadd.xlane.f32.xlu0 %v368_v47  ;;  %v597_v57 = vsub.f32 %v3588_v2, %v596_v55 }
 0x349   :  { %v598_v58 = vmul.f32 1.442695, %v597_v57 }
 0x34b   :  { %3094 = vpow2.f32 %v598_v58 }
 0x34d   :  { %v3617_v50 = vpop.eup %3092 }
 0x34e   :  { %v484_v51 = vsel %vm202_vm2, %v3617_v50, 0.0  ;;  %v713_v52 = vpop.xlane.xlu1 %712 }
 0x34f   :  { %485 = vadd.xlane.f32.xlu1 %v484_v51  ;;  %v714_v59 = vsub.f32 %v3592_v10, %v713_v52 }
 0x351   :  { %v715_v62 = vmul.f32 1.442695, %v714_v59 }
 0x353   :  { %3096 = vpow2.f32 %v715_v62 }
 0x355   :  { %v3095_v5 = vpop.eup %3094 }
 0x356   :  { %v825_v60 = vpop.xlane.xlu0 %824  ;;  %v600_v6 = vsel %vm202_vm2, %v3095_v5, 0.0 }
 0x357   :  { %v826_v61 = vsub.f32 %v3596_v18, %v825_v60 }
 0x35a   :  { %v375_v13 = vpop.permute.xlu0 %374 }
 0x35b   :  { %v380_v25 = vsel %vm266_vm4, %v375_v13, 0 }
 0x35d   :  { %490 = vrot.lane.b32.xlu0 %v3515_v12, %s3353_s29  ;;  %v3631_v7 = vpop.eup %3096 }
 0x35e   :  { %v940_v53 = vpop.xlane.xlu1 %939  ;;  %v717_v8 = vsel %vm202_vm2, %v3631_v7, 0.0 }
 0x35f   :  { %v941_v63 = vsub.f32 %v933_v24, %v940_v53 }
 0x360   :  { %606 = vrot.lane.b32.xlu1 %v3515_v12, %s3354_s11  ;;  %v827_v12 = vmul.f32 1.442695, %v826_v61 }
 0x361   :  { %v942_v1 = vmul.f32 1.442695, %v941_v63 }
 0x362   :  { %v262_v54 = vpop.permute.xlu1 %261  ;;  %3098 = vpow2.f32 %v827_v12 }
 0x363   :  { %v268_v56 = vsel %vm266_vm4, %v262_v54, 0  ;;  %3100 = vpow2.f32 %v942_v1 }
 0x364   :  { %2809 = vmatpush3.bf16.msra.mxu0 %v268_v56 }
 0x365   :  { %2820 = vmatprep.subr.bf16.mxu0 %v3342_v0 }
 0x36c   :  { %v3633_v2 = vpop.eup %3098 }
 0x36d   :  { %v3637_v9 = vpop.eup %3100  ;;  %v829_v10 = vsel %vm202_vm2, %v3633_v2, 0.0 }
 0x36e   :  { %v944_v11 = vsel %vm202_vm2, %v3637_v9, 0.0 }
 0x37c   :  { %601 = vadd.xlane.f32.xlu0 %v600_v6 }
 0x380   :  { %718 = vadd.xlane.f32.xlu0 %v717_v8 }
 0x384   :  { %830 = vadd.xlane.f32.xlu1 %v829_v10  ;;  %945 = vadd.xlane.f32.xlu0 %v944_v11 }
 0x38b   :  { %v1055_v14 = vpop.xlane.xlu0 %1054 }
 0x38c   :  { %v1056_v15 = vsub.f32 %v3601_v30, %v1055_v14 }
 0x38e   :  { %v1057_v16 = vmul.f32 1.442695, %v1056_v15 }
 0x390   :  { %3102 = vpow2.f32 %v1057_v16 }
 0x395   :  { %835 = vrot.lane.b32.xlu1 %v3527_v17, %s3352_s24 }
 0x399   :  { %950 = vrot.lane.b32.xlu1 %v3527_v17, %s3353_s29 }
 0x39a   :  { %v3648_v18 = vpop.eup %3102 }
 0x39b   :  { %v1059_v19 = vsel %vm202_vm2, %v3648_v18, 0.0 }
 0x39c   :  { %1060 = vadd.xlane.f32.xlu0 %v1059_v19 }
 0x39d   :  { %1065 = vrot.lane.b32.xlu1 %v3527_v17, %s3354_s11 }
 0x3b2   :  { %723 = vrot.lane.b32.xlu0 %v3527_v17, %s3337_s10  ;;  %s3355_s10 = smov 16  }
 0x3cc   :  { %v257_v20 = vpop.xlane.xlu1 %256 }
 0x3cd   :  { %3104 = vrcp.f32 %v257_v20 }
 0x3d4   :  { %v370_v21 = vpop.xlane.xlu0 %369 }
 0x3d5   :  { %3106 = vrcp.f32 %v370_v21 }
 0x3d7   :  { %v3105_v22 = vpop.eup %3104 }
 0x3d8   :  { %v259_v23 = vmul.f32 %v3105_v22, %v3609_v41  ;;  %v491_v28 = vpop.permute.xlu0 %490 }
 0x3d9   :  { %v496_v30 = vsel %vm266_vm4, %v491_v28, 0 }
 0x3da   :  { %v260_v24 = vpack.c.bf16 %v259_v23, %v259_v23 }
 0x3dc   :  { %2811 = vmatmul.mubr.msk.bf16.vlgmr.msra.gmra.mrb[0].mxu0 %vm202_vm2, %v260_v24  ;;  %v486_v26 = vpop.xlane.xlu1 %485 }
 0x3dd   :  { %2821 = vmatpush3.bf16.msra.mxu0 %v380_v25  ;;  %3108 = vrcp.f32 %v486_v26  ;;  %2822 = vmatprep.mubr.msk.bf16.mxu0 %vm3343_vm0, %v3342_v0 }
 0x3de   :  { %2832 = vmatprep.subr.bf16.mxu0 %v3342_v0 }
 0x3df   :  { %v3107_v17 = vpop.eup %3106 }
 0x3e0   :  { %v372_v27 = vmul.f32 %v3107_v17, %v3613_v49  ;;  %v607_v33 = vpop.permute.xlu1 %606 }
 0x3e1   :  { %v612_v35 = vsel %vm266_vm4, %v607_v33, 0 }
 0x3e2   :  { %v373_v29 = vpack.c.bf16 %v372_v27, %v372_v27 }
 0x3e4   :  { %2823 = vmatmul.mubr.msk.bf16.vlgmr.msra.gmra.mrb[4].mxu0 %vm202_vm2, %v373_v29  ;;  %v3074_v29 = vld [vmem:[%s4002_s5] sm:$0xff]  }
 0x3e5   :  { %2833 = vmatpush3.bf16.msra.mxu0 %v496_v30  ;;  %2834 = vmatprep.mubr.msk.bf16.mxu0 %vm3343_vm0, %v3342_v0  ;;  %v3075_v30 = vld [vmem:[%s4002_s5 + $0x8] sm:$0xff]  }
 0x3e6   :  { %2844 = vmatprep.subr.bf16.mxu0 %v3342_v0  ;;  %2899 = vmatpush3.bf16.msra.mxu1 %v3074_v29 }
 0x3e7   :  { %v3109_v31 = vpop.eup %3108  ;;  %2900 = vmatprep.subr.bf16.mxu1 %v3342_v0 }
 0x3e8   :  { %v488_v32 = vmul.f32 %v3109_v31, %v3617_v50 }
 0x3ea   :  { %v489_v34 = vpack.c.bf16 %v488_v32, %v488_v32  ;;  %2901 = vmatpush3.bf16.msra.mxu1 %v3075_v30  ;;  %v2654_v30 = vld [vmem:[#allocation12 + $0x3] ss:$0 sm:$0xff] }
 0x3ec   :  { %2835 = vmatmul.mubr.msk.bf16.vlgmr.msra.gmra.mrb[8].mxu0 %vm202_vm2, %v489_v34 }
 0x3ed   :  { %2845 = vmatpush3.bf16.msra.mxu0 %v612_v35  ;;  %2846 = vmatprep.mubr.msk.bf16.mxu0 %vm3343_vm0, %v3342_v0 }
 0x3ee   :  { %2856 = vmatprep.subr.bf16.mxu0 %v3342_v0 }
 0x409   :  { %v602_v36 = vpop.xlane.xlu0 %601 }
 0x40a   :  { %3110 = vrcp.f32 %v602_v36 }
 0x40d   :  { %v719_v40 = vpop.xlane.xlu0 %718 }
 0x40e   :  { %3112 = vrcp.f32 %v719_v40 }
 0x411   :  { %v831_v41 = vpop.xlane.xlu1 %830  ;;  %v946_v43 = vpop.xlane.xlu0 %945 }
 0x412   :  { %3114 = vrcp.f32 %v831_v41 }
 0x413   :  { %3116 = vrcp.f32 %v946_v43 }
 0x414   :  { %v3111_v37 = vpop.eup %3110 }
 0x415   :  { %v604_v38 = vmul.f32 %v3111_v37, %v3095_v5  ;;  %v836_v50 = vpop.permute.xlu1 %835 }
 0x416   :  { %v841_v53 = vsel %vm266_vm4, %v836_v50, 0  ;;  %v2649_v50 = vld [vmem:[#allocation12 + $0x1] ss:$0 sm:$0xff] }
 0x417   :  { %v605_v39 = vpack.c.bf16 %v604_v38, %v604_v38 }
 0x418   :  { %v3113_v45 = vpop.eup %3112 }
 0x419   :  { %2847 = vmatmul.mubr.msk.bf16.vlgmr.msra.gmra.mrb[12].mxu0 %vm202_vm2, %v605_v39  ;;  %v721_v48 = vmul.f32 %v3113_v45, %v3631_v7  ;;  %v951_v55 = vpop.permute.xlu1 %950 }
 0x41a   :  { %2858 = vmatprep.mubr.msk.bf16.mxu0 %vm3343_vm0, %v3342_v0  ;;  %v956_v58 = vsel %vm266_vm4, %v951_v55, 0 }
 0x41b   :  { %v722_v51 = vpack.c.bf16 %v721_v48, %v721_v48 }
 0x41c   :  { %v3115_v52 = vpop.eup %3114 }
 0x41d   :  { %v833_v54 = vmul.f32 %v3115_v52, %v3633_v2  ;;  %v3117_v57 = vpop.eup %3116  ;;  %v1066_v60 = vpop.permute.xlu1 %1065 }
 0x41e   :  { %v948_v59 = vmul.f32 %v3117_v57, %v3637_v9  ;;  %v1071_v63 = vsel %vm266_vm4, %v1066_v60, 0 }
 0x41f   :  { %v834_v56 = vpack.c.bf16 %v833_v54, %v833_v54 }
 0x420   :  { %v949_v61 = vpack.c.bf16 %v948_v59, %v948_v59 }
 0x429   :  { %v1061_v46 = vpop.xlane.xlu0 %1060 }
 0x42a   :  { %3118 = vrcp.f32 %v1061_v46 }
 0x42d   :  { %v724_v49 = vpop.permute.xlu0 %723 }
 0x42e   :  { %v729_v47 = vsel %vm266_vm4, %v724_v49, 0 }
 0x42f   :  { %2857 = vmatpush3.bf16.msra.mxu0 %v729_v47 }
 0x430   :  { %2868 = vmatprep.subr.bf16.mxu0 %v3342_v0 }
 0x432   :  { %2859 = vmatmul.mubr.msk.bf16.vlgmr.msra.gmra.mrb[16].mxu0 %vm202_vm2, %v722_v51 }
 0x433   :  { %2869 = vmatpush3.bf16.msra.mxu0 %v841_v53  ;;  %2870 = vmatprep.mubr.msk.bf16.mxu0 %vm3343_vm0, %v3342_v0 }
 0x434   :  { %2880 = vmatprep.subr.bf16.mxu0 %v3342_v0  ;;  %v3119_v62 = vpop.eup %3118 }
 0x435   :  { %v1063_v12 = vmul.f32 %v3119_v62, %v3648_v18 }
 0x437   :  { %v1064_v1 = vpack.c.bf16 %v1063_v12, %v1063_v12 }
 0x43a   :  { %2871 = vmatmul.mubr.msk.bf16.vlgmr.msra.gmra.mrb[20].mxu0 %vm202_vm2, %v834_v56 }
 0x43b   :  { %2881 = vmatpush3.bf16.msra.mxu0 %v956_v58  ;;  %2882 = vmatprep.mubr.msk.bf16.mxu0 %vm3343_vm0, %v3342_v0 }
 0x43c   :  { %2892 = vmatprep.subr.bf16.mxu0 %v3342_v0 }
 0x442   :  { %2883 = vmatmul.mubr.msk.bf16.vlgmr.msra.gmra.mrb[24].mxu0 %vm202_vm2, %v949_v61 }
 0x443   :  { %2893 = vmatpush3.bf16.msra.mxu0 %v1071_v63  ;;  %2894 = vmatprep.mubr.msk.bf16.mxu0 %vm3343_vm0, %v3342_v0 }
 0x444   :  { %2906 = vmatprep.subr.bf16.mxu0 %v3342_v0 }
 0x44a   :  { %2895 = vmatmul.mubr.msk.bf16.vlgmr.msra.gmra.mrb[28].mxu0 %vm202_vm2, %v1064_v1 }
 0x44b   :  { %2910 = vmatprep.mubr.msk.bf16.mxu0 %vm3343_vm0, %v3342_v0 }
 0x4af   :  { %v304_v5 = vpop.f32.mrb[0].mxu0 }
 0x4b0   :  { %310 = vst.msk [vmem:[#allocation2] sm:$0xff] %vm202_vm2, %v304_v5  ;;  %v2812_v6 = vpop.f32.mrb[1].mxu0 }
 0x4b1   :  { %v307_v7 = vpop.f32.mrb[2].mxu0 }
 0x4b2   :  { %v2813_v2 = vpop.f32.mrb[3].mxu0 }
 0x4b7   :  { %v416_v8 = vpop.f32.mrb[4].mxu0 }
 0x4b8   :  { %423 = vrot.lane.b32.xlu1 %v416_v8, %s3334_s20  ;;  %v2824_v9 = vpop.f32.mrb[5].mxu0  ;;  %v3076_v8 = vld [vmem:[#allocation9] sm:$0xff]  }
 0x4b9   :  { %v419_v10 = vpop.f32.mrb[6].mxu0  ;;  %2914 = vmatprep.subr.bf16.mxu1 %v3076_v8  ;;  %v118_v9 = vld [vmem:[#allocation6] sm:$0xff] }
 0x4ba   :  { %v2825_v11 = vpop.f32.mrb[7].mxu0  ;;  %v119_v10 = vld [vmem:[#allocation6 + $0x8] sm:$0xff] }
 0x4bb   :  { %v1302_v11 = vpack.c.bf16 %v119_v10, %v118_v9 }
 0x4bf   :  { %v532_v13 = vpop.f32.mrb[8].mxu0 }
 0x4c0   :  { %539 = vrot.lane.b32.xlu0 %v532_v13, %s3355_s10  ;;  %v2836_v14 = vpop.f32.mrb[9].mxu0  ;;  %v120_v13 = vld [vmem:[#allocation6 + $0x10] sm:$0xff] }
 0x4c1   :  { %v535_v15 = vpop.f32.mrb[10].mxu0  ;;  %v121_v14 = vld [vmem:[#allocation6 + $0x18] sm:$0xff] }
 0x4c2   :  { %v2837_v16 = vpop.f32.mrb[11].mxu0  ;;  %v1303_v15 = vpack.c.bf16 %v121_v14, %v120_v13 }
 0x4c3   :  { %v3078_v16 = vld [vmem:[%s4002_s5 + $0x10] sm:$0xff]  }
 0x4c4   :  { %2907 = vmatpush3.bf16.msra.mxu0 %v3078_v16  ;;  %v1376_v16 = vld [vmem:[%s3999_s2] sm:$0x1] }
 0x4c5   :  { %2908 = vmatprep.subr.bf16.mxu0 %v3342_v0  ;;  %vm1377_vm8 = vcmp.gt.f32.partialorder %v1376_v16, 0.5 }
 0x4ec   :  { %v648_v18 = vpop.f32.mrb[12].mxu0 }
 0x4ed   :  { %655 = vrot.lane.b32.xlu0 %v648_v18, %s3356_s3  ;;  %v2848_v19 = vpop.f32.mrb[13].mxu0  ;;  %v3079_v18 = vld [vmem:[%s4002_s5 + $0x18] sm:$0xff]  }
 0x4ee   :  { %v651_v20 = vpop.f32.mrb[14].mxu0  ;;  %2909 = vmatpush3.bf16.msra.mxu0 %v3079_v18  ;;  %v1383_v18 = vsub.s32 0, %v3581_v42 }
 0x4ef   :  { %v2849_v21 = vpop.f32.mrb[15].mxu0  ;;  %2922 = vmatprep.subr.bf16.mxu0 %v3342_v0 }
 0x505   :  { %v765_v22 = vpop.f32.mrb[16].mxu0 }
 0x506   :  { %771 = vst.msk [vmem:[#allocation2 + $0x8] sm:$0xff] %vm202_vm2, %v765_v22  ;;  %v2860_v23 = vpop.f32.mrb[17].mxu0 }
 0x507   :  { %v768_v24 = vpop.f32.mrb[18].mxu0 }
 0x508   :  { %v2861_v25 = vpop.f32.mrb[19].mxu0 }
 0x50d   :  { %v877_v26 = vpop.f32.mrb[20].mxu0 }
 0x50e   :  { %884 = vrot.lane.b32.xlu1 %v877_v26, %s3334_s20  ;;  %v2872_v17 = vpop.f32.mrb[21].mxu0 }
 0x50f   :  { %v880_v27 = vpop.f32.mrb[22].mxu0  ;;  %v2653_v17 = vld [vmem:[#allocation12 + $0x2] ss:$0 sm:$0xff] }
 0x510   :  { %v2873_v28 = vpop.f32.mrb[23].mxu0 }
 0x515   :  { %v992_v31 = vpop.f32.mrb[24].mxu0 }
 0x516   :  { %999 = vrot.lane.b32.xlu1 %v992_v31, %s3355_s10  ;;  %v2884_v32 = vpop.f32.mrb[25].mxu0 }
 0x517   :  { %v995_v33 = vpop.f32.mrb[26].mxu0 }
 0x518   :  { %v2885_v34 = vpop.f32.mrb[27].mxu0 }
 0x51d   :  { %v1107_v35 = vpop.f32.mrb[28].mxu0 }
 0x51e   :  { %1114 = vrot.lane.b32.xlu1 %v1107_v35, %s3356_s3  ;;  %v2896_v36 = vpop.f32.mrb[29].mxu0  ;;  %v2663_v35 = vld [vmem:[#allocation12 + $0x5] ss:$0 sm:$0xff] }
 0x51f   :  { %v1110_v37 = vpop.f32.mrb[30].mxu0 }
 0x520   :  { %v2897_v38 = vpop.f32.mrb[31].mxu0 }
 0x52a   :  { %v424_v39 = vpop.permute.xlu1 %423 }
 0x52b   :  { %427 = vst.msk [vmem:[#allocation2] sm:$0xff] %vm426_vm5, %v424_v39 }
 0x532   :  { %v540_v40 = vpop.permute.xlu0 %539 }
 0x533   :  { %543 = vst.msk [vmem:[#allocation2] sm:$0xff] %vm542_vm6, %v540_v40 }
 0x55f   :  { %v656_v41 = vpop.permute.xlu0 %655 }
 0x560   :  { %659 = vst.msk [vmem:[#allocation2] sm:$0xff] %vm658_vm7, %v656_v41 }
 0x567   :  { %v1118_v48 = vld [vmem:[#allocation2] sm:$0xff] }
 0x580   :  { %v885_v43 = vpop.permute.xlu1 %884 }
 0x581   :  { %887 = vst.msk [vmem:[#allocation2 + $0x8] sm:$0xff] %vm426_vm5, %v885_v43 }
 0x588   :  { %v1000_v45 = vpop.permute.xlu1 %999 }
 0x589   :  { %1002 = vst.msk [vmem:[#allocation2 + $0x8] sm:$0xff] %vm542_vm6, %v1000_v45 }
 0x590   :  { %v1115_v46 = vpop.permute.xlu1 %1114 }
 0x591   :  { %1117 = vst.msk [vmem:[#allocation2 + $0x8] sm:$0xff] %vm658_vm7, %v1115_v46 }
 0x598   :  { %v1119_v49 = vld [vmem:[#allocation2 + $0x8] sm:$0xff] }
 0x599   :  { %v1124_v47 = vpack.c.bf16 %v1119_v49, %v1118_v48 }
 0x59b   :  { %2903 = vmatmul.mubr.msk.bf16.vlgmr.msra.gmra.mrb[36].mxu1 %vm150_vm1, %v1124_v47  ;;  %v2659_v47 = vld [vmem:[#allocation12 + $0x4] ss:$0 sm:$0xff] }
 0x59c   :  { %2915 = vmatpush3.bf16.msra.mxu1 %v3076_v8  ;;  %2918 = vmatprep.mubr.msk.bf16.mxu1 %vm150_vm1, %v1302_v11 }
 0x66e   :  { %v1179_v51 = vpop.f32.mrb[36].mxu1 }
 0x66f   :  { %v1180_v52 = vadd.f32 %v2649_v50, %v1179_v51  ;;  %v2904_v53 = vpop.f32.mrb[37].mxu1 }
 0x670   :  { %v1182_v54 = vpop.f32.mrb[38].mxu1 }
 0x671   :  { %v1183_v55 = vadd.f32 %v2649_v50, %v1182_v54  ;;  %v2905_v56 = vpop.f32.mrb[39].mxu1  ;;  %v1186_v57 = vadd.f32 %v1180_v52, %v3504_v3 }
 0x673   :  { %v1190_v58 = vsel %vm150_vm1, %v1186_v57, 0.0  ;;  %v1187_v59 = vadd.f32 %v1183_v55, %v3506_v4  ;;  %v3077_v4 = vld [vmem:[#allocation9 + $0x8] sm:$0xff]  }
 0x674   :  { %1191 = vadd.xlane.f32.xlu0 %v1190_v58  ;;  %2916 = vmatprep.subr.bf16.mxu1 %v3077_v4 }
 0x675   :  { %v1193_v60 = vsel %vm150_vm1, %v1187_v59, 0.0  ;;  %2917 = vmatpush3.bf16.msra.mxu1 %v3077_v4 }
 0x676   :  { %1194 = vadd.xlane.f32.xlu1 %v1193_v60  ;;  %2928 = vmatprep.subr.bf16.mxu1 %v3342_v0 }
 0x678   :  { %2919 = vmatmul.mubr.msk.bf16.vlgmr.msra.gmra.mrb[40].mxu1 %vm150_vm1, %v1303_v15 }
 0x679   :  { %2930 = vmatprep.mubr.msk.bf16.mxu1 %vm3343_vm0, %v3342_v0 }
 0x701   :  { %v1192_v61 = vpop.xlane.xlu0 %1191 }
 0x702   :  { %v1197_v62 = vmul.f32 0.03125, %v1192_v61 }
 0x703   :  { %v1195_v63 = vpop.xlane.xlu1 %1194 }
 0x704   :  { %v1199_v12 = vsub.f32 %v1186_v57, %v1197_v62  ;;  %v1198_v1 = vmul.f32 0.03125, %v1195_v63 }
 0x706   :  { %v1200_v5 = vsub.f32 %v1187_v59, %v1198_v1  ;;  %v1201_v6 = vmul.f32 %v1199_v12, %v1199_v12 }
 0x708   :  { %v1203_v7 = vsel %vm150_vm1, %v1201_v6, 0.0  ;;  %v1202_v2 = vmul.f32 %v1200_v5, %v1200_v5 }
 0x709   :  { %1204 = vadd.xlane.f32.xlu0 %v1203_v7 }
 0x70a   :  { %v1206_v3 = vsel %vm150_vm1, %v1202_v2, 0.0 }
 0x70d   :  { %1207 = vadd.xlane.f32.xlu0 %v1206_v3 }
 0x74b   :  { %v2920_v36 = vpop.f32.mrb[40].mxu1 }
 0x74c   :  { %v1370_v37 = vadd.f32 %v2920_v36, %v2663_v35  ;;  %v1361_v38 = vpop.f32.mrb[41].mxu1 }
 0x74d   :  { %v1362_v39 = vadd.f32 %v2663_v35, %v1361_v38  ;;  %v2921_v40 = vpop.f32.mrb[42].mxu1 }
 0x74e   :  { %v1373_v41 = vadd.f32 %v2921_v40, %v2663_v35  ;;  %v1364_v43 = vpop.f32.mrb[43].mxu1 }
 0x74f   :  { %v1365_v45 = vadd.f32 %v2663_v35, %v1364_v43 }
 0x750   :  { %v3751_v46 = vpack.c.bf16 %v1373_v41, %v1370_v37 }
 0x751   :  { %v3753_v48 = vpack.c.bf16 %v1365_v45, %v1362_v39  ;;  %v1832_v39 = vld [vmem:[%s3999_s2 + $0x1] sm:$0x1] }
 0x752   :  { %v1845_v2 = vsel %vm202_vm2, %v3751_v46, 0  ;;  %vm1833_vm10 = vcmp.gt.f32.partialorder %v1832_v39, 0.5 }
 0x753   :  { %1495 = vrot.lane.b32.xlu1 %v3753_v48, %s3345_s12  ;;  %v1389_v49 = vsel %vm202_vm2, %v3753_v48, 0 }
 0x757   :  { %1608 = vrot.lane.b32.xlu1 %v3753_v48, %s3348_s27 }
 0x796   :  { %v1205_v19 = vpop.xlane.xlu0 %1204 }
 0x797   :  { %v1209_v20 = vmul.f32 0.03125, %v1205_v19  ;;  %v1378_v19 = vsel %vm1377_vm8, 0.0, %v3351_v44 }
 0x799   :  { %v1211_v21 = vadd.f32 1e-12, %v1209_v20  ;;  %v1384_v20 = vrot.slane %v1378_v19, %v1383_v18 }
 0x79a   :  { %v1208_v22 = vpop.xlane.xlu0 %1207 }
 0x79b   :  { %3120 = vrsqrt.f32 %v1211_v21  ;;  %v1210_v23 = vmul.f32 0.03125, %v1208_v22 }
 0x79d   :  { %v1212_v24 = vadd.f32 1e-12, %v1210_v23 }
 0x79f   :  { %3122 = vrsqrt.f32 %v1212_v24 }
 0x7a5   :  { %v3121_v25 = vpop.eup %3120 }
 0x7a6   :  { %v1215_v26 = vmul.f32 %v3121_v25, %v1199_v12 }
 0x7a8   :  { %v1221_v28 = vmul.f32 %v2653_v17, %v1215_v26 }
 0x7a9   :  { %v3123_v27 = vpop.eup %3122 }
 0x7aa   :  { %v1216_v29 = vmul.f32 %v3123_v27, %v1200_v5  ;;  %v3742_v32 = vadd.f32 %v2654_v30, %v1221_v28 }
 0x7ac   :  { %v1222_v31 = vmul.f32 %v2653_v17, %v1216_v29 }
 0x7ae   :  { %v3744_v33 = vadd.f32 %v2654_v30, %v1222_v31 }
 0x7b0   :  { %v1234_v34 = vpack.c.bf16 %v3744_v33, %v3742_v32 }
 0x7b2   :  { %2911 = vmatmul.mubr.msk.bf16.vlgmr.msra.gmra.mrb[32].mxu0 %vm150_vm1, %v1234_v34 }
 0x7b3   :  { %2924 = vmatprep.mubr.msk.bf16.mxu0 %vm3343_vm0, %v3342_v0  ;;  %2923 = vmatpush3.bf16.xpose.msra.mxu0 %v1389_v49  ;;  %v1834_v49 = vsel %vm1833_vm10, 0.0, %v3351_v44 }
 0x7b4   :  { %2934 = vmatprep.subr.bf16.mxu0 %v3342_v0 }
 0x7c5   :  { %v1496_v58 = vpop.permute.xlu1 %1495 }
 0x7c6   :  { %v1501_v59 = vsel %vm202_vm2, %v1496_v58, 0 }
 0x7c9   :  { %v1609_v62 = vpop.permute.xlu1 %1608 }
 0x7ca   :  { %v1614_v12 = vsel %vm202_vm2, %v1609_v62, 0 }
 0x885   :  { %v1289_v50 = vpop.f32.mrb[32].mxu0 }
 0x886   :  { %v1290_v51 = vadd.f32 %v2659_v47, %v1289_v50  ;;  %v2912_v52 = vpop.f32.mrb[33].mxu0 }
 0x887   :  { %v1292_v53 = vpop.f32.mrb[34].mxu0 }
 0x888   :  { %v1296_v54 = vmul.f32 0.35355338, %v1290_v51  ;;  %v2913_v55 = vpop.f32.mrb[35].mxu0  ;;  %v1293_v57 = vadd.f32 %v2659_v47, %v1292_v53  ;;  %v1840_v51 = vrot.slane %v1834_v49, %v1383_v18 }
 0x88a   :  { %v1379_v56 = vpack.c.bf16 %v1296_v54, %v1296_v54  ;;  %v1297_v60 = vmul.f32 0.35355338, %v1293_v57 }
 0x88c   :  { %1493 = vrot.lane.b32.xlu0 %v1379_v56, %s3345_s12  ;;  %1606 = vrot.lane.b32.xlu1 %v1379_v56, %s3348_s27  ;;  %v1835_v61 = vpack.c.bf16 %v1297_v60, %v1297_v60 }
 0x88d   :  { %2925 = vmatmul.mubr.msk.bf16.vlgmr.msra.gmra.mrb[36].mxu0 %vm202_vm2, %v1379_v56 }
 0x88e   :  { %2935 = vmatpush3.bf16.xpose.msra.mxu0 %v1501_v59  ;;  %2936 = vmatprep.mubr.msk.bf16.mxu0 %vm3343_vm0, %v3342_v0 }
 0x88f   :  { %2946 = vmatprep.subr.bf16.mxu0 %v3342_v0 }
 0x890   :  { %1721 = vrot.lane.b32.xlu0 %v3753_v48, %s3350_s4  ;;  %1719 = vrot.lane.b32.xlu1 %v1379_v56, %s3350_s4 }
 0x894   :  { %1950 = vrot.lane.b32.xlu0 %v3751_v46, %s3345_s12  ;;  %1948 = vrot.lane.b32.xlu1 %v1835_v61, %s3345_s12 }
 0x898   :  { %2063 = vrot.lane.b32.xlu0 %v3751_v46, %s3348_s27  ;;  %2061 = vrot.lane.b32.xlu1 %v1835_v61, %s3348_s27 }
 0x89c   :  { %2176 = vrot.lane.b32.xlu0 %v3751_v46, %s3350_s4  ;;  %2174 = vrot.lane.b32.xlu1 %v1835_v61, %s3350_s4 }
 0x8fe   :  { %v1494_v63 = vpop.permute.xlu0 %1493  ;;  %v1607_v5 = vpop.permute.xlu1 %1606 }
 0x8ff   :  { %2937 = vmatmul.mubr.msk.bf16.vlgmr.msra.gmra.mrb[40].mxu0 %vm202_vm2, %v1494_v63 }
 0x900   :  { %2947 = vmatpush3.bf16.xpose.msra.mxu0 %v1614_v12  ;;  %2948 = vmatprep.mubr.msk.bf16.mxu0 %vm3343_vm0, %v3342_v0 }
 0x901   :  { %2958 = vmatprep.subr.bf16.mxu0 %v3342_v0 }
 0x902   :  { %v1722_v1 = vpop.permute.xlu0 %1721  ;;  %v1720_v7 = vpop.permute.xlu1 %1719 }
 0x903   :  { %v1727_v6 = vsel %vm202_vm2, %v1722_v1, 0 }
 0x906   :  { %v1951_v3 = vpop.permute.xlu0 %1950  ;;  %v1949_v9 = vpop.permute.xlu1 %1948 }
 0x907   :  { %2949 = vmatmul.mubr.msk.bf16.vlgmr.msra.gmra.mrb[44].mxu0 %vm202_vm2, %v1607_v5  ;;  %v1956_v8 = vsel %vm202_vm2, %v1951_v3, 0 }
 0x908   :  { %2959 = vmatpush3.bf16.xpose.msra.mxu0 %v1727_v6  ;;  %2960 = vmatprep.mubr.msk.bf16.mxu0 %vm3343_vm0, %v3342_v0 }
 0x909   :  { %2970 = vmatprep.subr.bf16.mxu0 %v3342_v0 }
 0x90a   :  { %v2064_v4 = vpop.permute.xlu0 %2063  ;;  %v2062_v13 = vpop.permute.xlu1 %2061 }
 0x90b   :  { %v2069_v10 = vsel %vm202_vm2, %v2064_v4, 0 }
 0x90e   :  { %v2177_v11 = vpop.permute.xlu0 %2176  ;;  %v2175_v15 = vpop.permute.xlu1 %2174 }
 0x90f   :  { %2961 = vmatmul.mubr.msk.bf16.vlgmr.msra.gmra.mrb[48].mxu0 %vm202_vm2, %v1720_v7  ;;  %v2182_v14 = vsel %vm202_vm2, %v2177_v11, 0 }
 0x910   :  { %2971 = vmatpush3.bf16.xpose.msra.mxu0 %v1845_v2  ;;  %2972 = vmatprep.mubr.msk.bf16.mxu0 %vm3343_vm0, %v3342_v0 }
 0x911   :  { %2982 = vmatprep.subr.bf16.mxu0 %v3342_v0 }
 0x917   :  { %2973 = vmatmul.mubr.msk.bf16.vlgmr.msra.gmra.mrb[52].mxu0 %vm202_vm2, %v1835_v61 }
 0x918   :  { %2983 = vmatpush3.bf16.xpose.msra.mxu0 %v1956_v8  ;;  %2984 = vmatprep.mubr.msk.bf16.mxu0 %vm3343_vm0, %v3342_v0 }
 0x919   :  { %2994 = vmatprep.subr.bf16.mxu0 %v3342_v0 }
 0x91f   :  { %2985 = vmatmul.mubr.msk.bf16.vlgmr.msra.gmra.mrb[56].mxu0 %vm202_vm2, %v1949_v9 }
 0x920   :  { %2995 = vmatpush3.bf16.xpose.msra.mxu0 %v2069_v10  ;;  %2996 = vmatprep.mubr.msk.bf16.mxu0 %vm3343_vm0, %v3342_v0 }
 0x921   :  { %3006 = vmatprep.subr.bf16.mxu0 %v3342_v0 }
 0x927   :  { %2997 = vmatmul.mubr.msk.bf16.vlgmr.msra.gmra.mrb[60].mxu0 %vm202_vm2, %v2062_v13 }
 0x928   :  { %3007 = vmatpush3.bf16.xpose.msra.mxu0 %v2182_v14  ;;  %3008 = vmatprep.mubr.msk.bf16.mxu0 %vm3343_vm0, %v3342_v0 }
 0x929   :  { %3018 = vmatprep.subr.bf16.mxu0 %v3342_v0 }
 0x92f   :  { %3009 = vmatmul.mubr.msk.bf16.vlgmr.msra.gmra.mrb[64].mxu0 %vm202_vm2, %v2175_v15 }
 0x930   :  { %3022 = vmatprep.mubr.msk.bf16.mxu0 %vm3343_vm0, %v3342_v0 }
 0x960   :  { %v1425_v21 = vpop.f32.mrb[36].mxu0 }
 0x961   :  { %v1426_v22 = vadd.f32 %v1425_v21, %v1384_v20  ;;  %v2926_v23 = vpop.f32.mrb[37].mxu0 }
 0x962   :  { %v1428_v24 = vpop.f32.mrb[38].mxu0 }
 0x963   :  { %v2927_v25 = vpop.f32.mrb[39].mxu0  ;;  %v1432_v26 = vsel %vm1431_vm9, %v1426_v22, -inf }
 0x964   :  { %1433 = vmax.xlane.f32.xlu0 %v1432_v26 }
 0x9d2   :  { %v1537_v17 = vpop.f32.mrb[40].mxu0 }
 0x9d3   :  { %v3821_v27 = vadd.f32 %v1537_v17, %v1384_v20  ;;  %v2938_v28 = vpop.f32.mrb[41].mxu0 }
 0x9d4   :  { %v1540_v29 = vpop.f32.mrb[42].mxu0 }
 0x9d5   :  { %v2939_v30 = vpop.f32.mrb[43].mxu0  ;;  %v1543_v42 = vsel %vm1431_vm9, %v3821_v27, -inf }
 0x9d6   :  { %1544 = vmax.xlane.f32.xlu1 %v1543_v42 }
 0x9da   :  { %v1650_v31 = vpop.f32.mrb[44].mxu0 }
 0x9db   :  { %v1651_v34 = vadd.f32 %v1650_v31, %v1384_v20  ;;  %v2950_v35 = vpop.f32.mrb[45].mxu0 }
 0x9dc   :  { %v1653_v36 = vpop.f32.mrb[46].mxu0 }
 0x9dd   :  { %v2951_v37 = vpop.f32.mrb[47].mxu0  ;;  %v1656_v38 = vsel %vm1431_vm9, %v1651_v34, -inf }
 0x9de   :  { %1657 = vmax.xlane.f32.xlu0 %v1656_v38 }
 0x9e2   :  { %v1763_v40 = vpop.f32.mrb[48].mxu0 }
 0x9e3   :  { %v3829_v41 = vadd.f32 %v1763_v40, %v1384_v20  ;;  %v2962_v43 = vpop.f32.mrb[49].mxu0 }
 0x9e4   :  { %v1766_v45 = vpop.f32.mrb[50].mxu0 }
 0x9e5   :  { %v2963_v47 = vpop.f32.mrb[51].mxu0  ;;  %v1769_v50 = vsel %vm1431_vm9, %v3829_v41, -inf }
 0x9e6   :  { %1770 = vmax.xlane.f32.xlu0 %v1769_v50 }
 0x9ea   :  { %v1881_v52 = vpop.f32.mrb[52].mxu0 }
 0x9eb   :  { %v3834_v53 = vadd.f32 %v1881_v52, %v1840_v51  ;;  %v2974_v54 = vpop.f32.mrb[53].mxu0 }
 0x9ec   :  { %v1884_v55 = vpop.f32.mrb[54].mxu0 }
 0x9ed   :  { %v2975_v56 = vpop.f32.mrb[55].mxu0  ;;  %v1887_v57 = vsel %vm1431_vm9, %v3834_v53, -inf }
 0x9ee   :  { %1888 = vmax.xlane.f32.xlu1 %v1887_v57 }
 0x9f1   :  { %v1434_v9 = vpop.xlane.xlu0 %1433 }
 0x9f2   :  { %v1992_v58 = vpop.f32.mrb[56].mxu0  ;;  %v1435_v10 = vsub.f32 %v1426_v22, %v1434_v9 }
 0x9f3   :  { %v1993_v59 = vadd.f32 %v1992_v58, %v1840_v51  ;;  %v2986_v60 = vpop.f32.mrb[57].mxu0 }
 0x9f4   :  { %v1995_v44 = vpop.f32.mrb[58].mxu0  ;;  %v1436_v11 = vmul.f32 1.442695, %v1435_v10 }
 0x9f5   :  { %v2987_v61 = vpop.f32.mrb[59].mxu0  ;;  %v1998_v62 = vsel %vm1431_vm9, %v1993_v59, -inf }
 0x9f6   :  { %1999 = vmax.xlane.f32.xlu0 %v1998_v62  ;;  %3124 = vpow2.f32 %v1436_v11 }
 0x9fa   :  { %v2105_v63 = vpop.f32.mrb[60].mxu0 }
 0x9fb   :  { %v2106_v12 = vadd.f32 %v2105_v63, %v1840_v51  ;;  %v2998_v1 = vpop.f32.mrb[61].mxu0 }
 0x9fc   :  { %v2108_v5 = vpop.f32.mrb[62].mxu0 }
 0x9fd   :  { %v2999_v6 = vpop.f32.mrb[63].mxu0  ;;  %v2111_v7 = vsel %vm1431_vm9, %v2106_v12, -inf }
 0x9fe   :  { %2112 = vmax.xlane.f32.xlu1 %v2111_v7 }
 0xa00   :  { %v3845_v15 = vpop.eup %3124 }
 0xa01   :  { %v1438_v16 = vsel %vm1431_vm9, %v3845_v15, 0.0 }
 0xa02   :  { %v2218_v2 = vpop.f32.mrb[64].mxu0 }
 0xa03   :  { %v3010_v3 = vpop.f32.mrb[65].mxu0  ;;  %v2219_v13 = vadd.f32 %v2218_v2, %v1840_v51 }
 0xa04   :  { %v2221_v8 = vpop.f32.mrb[66].mxu0 }
 0xa05   :  { %v3011_v4 = vpop.f32.mrb[67].mxu0  ;;  %v2224_v14 = vsel %vm1431_vm9, %v2219_v13, -inf }
 0xa0c   :  { %1555 = vrot.lane.b32.xlu0 %v3753_v48, %s3346_s23 }
 0xa0f   :  { %1445 = vrot.lane.b32.xlu1 %v3753_v48, %s3344_s8 }
 0xa2b   :  { %2225 = vmax.xlane.f32.xlu0 %v2224_v14 }
 0xa33   :  { %1439 = vadd.xlane.f32.xlu1 %v1438_v16 }
 0xa63   :  { %v1545_v18 = vpop.xlane.xlu1 %1544 }
 0xa64   :  { %v1546_v19 = vsub.f32 %v3821_v27, %v1545_v18 }
 0xa66   :  { %v1547_v20 = vmul.f32 1.442695, %v1546_v19 }
 0xa68   :  { %3126 = vpow2.f32 %v1547_v20 }
 0xa6b   :  { %v1658_v21 = vpop.xlane.xlu0 %1657 }
 0xa6c   :  { %v1659_v23 = vsub.f32 %v1651_v34, %v1658_v21 }
 0xa6e   :  { %v1660_v22 = vmul.f32 1.442695, %v1659_v23 }
 0xa70   :  { %3128 = vpow2.f32 %v1660_v22 }
 0xa72   :  { %v3850_v24 = vpop.eup %3126 }
 0xa73   :  { %v1549_v25 = vsel %vm1431_vm9, %v3850_v24, 0.0  ;;  %v1771_v30 = vpop.xlane.xlu0 %1770 }
 0xa74   :  { %1550 = vadd.xlane.f32.xlu0 %v1549_v25  ;;  %v1772_v42 = vsub.f32 %v3829_v41, %v1771_v30 }
 0xa76   :  { %v1773_v31 = vmul.f32 1.442695, %v1772_v42 }
 0xa78   :  { %3130 = vpow2.f32 %v1773_v31 }
 0xa7a   :  { %v3854_v26 = vpop.eup %3128 }
 0xa7b   :  { %v1662_v17 = vsel %vm1431_vm9, %v3854_v26, 0.0  ;;  %v1889_v28 = vpop.xlane.xlu1 %1888 }
 0xa7c   :  { %1663 = vadd.xlane.f32.xlu1 %v1662_v17  ;;  %v1890_v34 = vsub.f32 %v3834_v53, %v1889_v28 }
 0xa7e   :  { %v1891_v37 = vmul.f32 1.442695, %v1890_v34 }
 0xa80   :  { %3132 = vpow2.f32 %v1891_v37 }
 0xa83   :  { %v2000_v35 = vpop.xlane.xlu0 %1999 }
 0xa84   :  { %v2001_v36 = vsub.f32 %v1993_v59, %v2000_v35 }
 0xa86   :  { %v2002_v39 = vmul.f32 1.442695, %v2001_v36 }
 0xa87   :  { %v1556_v52 = vpop.permute.xlu0 %1555 }
 0xa88   :  { %3134 = vpow2.f32 %v2002_v39 }
 0xa8a   :  { %1668 = vrot.lane.b32.xlu0 %v3753_v48, %s3347_s25 }
 0xa8b   :  { %v2113_v27 = vpop.xlane.xlu1 %2112 }
 0xa8c   :  { %v2114_v38 = vsub.f32 %v2106_v12, %v2113_v27 }
 0xa8d   :  { %1781 = vrot.lane.b32.xlu1 %v3753_v48, %s3349_s28  ;;  %v3131_v48 = vpop.eup %3130 }
 0xa8e   :  { %v2115_v40 = vmul.f32 1.442695, %v2114_v38  ;;  %v1775_v43 = vsel %vm1431_vm9, %v3131_v48, 0.0  ;;  %v3866_v45 = vpop.eup %3132 }
 0xa8f   :  { %v1446_v29 = vpop.permute.xlu1 %1445  ;;  %v1893_v49 = vsel %vm1431_vm9, %v3866_v45, 0.0 }
 0xa90   :  { %2929 = vmatpush3.bf16.msra.mxu1 %v1446_v29  ;;  %3136 = vpow2.f32 %v2115_v40 }
 0xa91   :  { %2940 = vmatprep.subr.bf16.mxu1 %v3342_v0 }
 0xa92   :  { %v3868_v41 = vpop.eup %3134 }
 0xa93   :  { %v2004_v50 = vsel %vm1431_vm9, %v3868_v41, 0.0 }
 0xa9a   :  { %v3872_v47 = vpop.eup %3136 }
 0xa9b   :  { %v2117_v51 = vsel %vm1431_vm9, %v3872_v47, 0.0 }
 0xaa9   :  { %1776 = vadd.xlane.f32.xlu0 %v1775_v43 }
 0xaad   :  { %1894 = vadd.xlane.f32.xlu0 %v1893_v49 }
 0xab1   :  { %2005 = vadd.xlane.f32.xlu1 %v2004_v50  ;;  %2118 = vadd.xlane.f32.xlu0 %v2117_v51 }
 0xab8   :  { %v2226_v53 = vpop.xlane.xlu0 %2225 }
 0xab9   :  { %v2227_v54 = vsub.f32 %v2219_v13, %v2226_v53 }
 0xabb   :  { %v2228_v55 = vmul.f32 1.442695, %v2227_v54 }
 0xabd   :  { %3138 = vpow2.f32 %v2228_v55 }
 0xac0   :  { %v1440_v56 = vpop.xlane.xlu1 %1439 }
 0xac1   :  { %3140 = vrcp.f32 %v1440_v56 }
 0xac2   :  { %2010 = vrot.lane.b32.xlu1 %v3751_v46, %s3346_s23 }
 0xac6   :  { %2123 = vrot.lane.b32.xlu1 %v3751_v46, %s3347_s25 }
 0xac7   :  { %v3882_v57 = vpop.eup %3138 }
 0xac8   :  { %v2230_v58 = vsel %vm1431_vm9, %v3882_v57, 0.0 }
 0xac9   :  { %2231 = vadd.xlane.f32.xlu0 %v2230_v58 }
 0xaca   :  { %2236 = vrot.lane.b32.xlu1 %v3751_v46, %s3349_s28 }
 0xacb   :  { %v3141_v59 = vpop.eup %3140 }
 0xacc   :  { %v1442_v60 = vmul.f32 %v3141_v59, %v3845_v15  ;;  %v3080_v59 = vld [vmem:[%s4002_s5 + $0x20] sm:$0xff]  }
 0xacd   :  { %3019 = vmatpush3.bf16.msra.mxu0 %v3080_v59  ;;  %v2694_v59 = vld [vmem:[#allocation12 + $0x9] ss:$0 sm:$0xff] }
 0xace   :  { %v1443_v44 = vpack.c.bf16 %v1442_v60, %v1442_v60  ;;  %v3081_v60 = vld [vmem:[%s4002_s5 + $0x28] sm:$0xff]   ;;  %3020 = vmatprep.subr.bf16.mxu0 %v3342_v0 }
 0xad0   :  { %2931 = vmatmul.mubr.msk.bf16.vlgmr.msra.gmra.mrb[44].mxu1 %vm1431_vm9, %v1443_v44 }
 0xad1   :  { %2941 = vmatpush3.bf16.msra.mxu1 %v1556_v52  ;;  %2942 = vmatprep.mubr.msk.bf16.mxu1 %vm3343_vm0, %v3342_v0 }
 0xad2   :  { %2952 = vmatprep.subr.bf16.mxu1 %v3342_v0  ;;  %3021 = vmatpush3.bf16.msra.mxu0 %v3081_v60 }
 0xad3   :  { %3034 = vmatprep.subr.bf16.mxu0 %v3342_v0 }
 0xadf   :  { %1900 = vrot.lane.b32.xlu0 %v3751_v46, %s3344_s8 }
 0xb01   :  { %v1551_v61 = vpop.xlane.xlu0 %1550 }
 0xb02   :  { %3142 = vrcp.f32 %v1551_v61 }
 0xb05   :  { %v1669_v5 = vpop.permute.xlu0 %1668 }
 0xb09   :  { %v1664_v62 = vpop.xlane.xlu1 %1663 }
 0xb0a   :  { %3144 = vrcp.f32 %v1664_v62 }
 0xb0c   :  { %v3143_v63 = vpop.eup %3142 }
 0xb0d   :  { %v1553_v12 = vmul.f32 %v3143_v63, %v3850_v24  ;;  %v1782_v2 = vpop.permute.xlu1 %1781 }
 0xb0f   :  { %v1554_v1 = vpack.c.bf16 %v1553_v12, %v1553_v12 }
 0xb11   :  { %2943 = vmatmul.mubr.msk.bf16.vlgmr.msra.gmra.mrb[48].mxu1 %vm1431_vm9, %v1554_v1 }
 0xb12   :  { %2953 = vmatpush3.bf16.msra.mxu1 %v1669_v5  ;;  %2954 = vmatprep.mubr.msk.bf16.mxu1 %vm3343_vm0, %v3342_v0 }
 0xb13   :  { %2964 = vmatprep.subr.bf16.mxu1 %v3342_v0 }
 0xb14   :  { %v3145_v6 = vpop.eup %3144 }
 0xb15   :  { %v1666_v46 = vmul.f32 %v3145_v6, %v3854_v26 }
 0xb17   :  { %v1667_v7 = vpack.c.bf16 %v1666_v46, %v1666_v46 }
 0xb19   :  { %2955 = vmatmul.mubr.msk.bf16.vlgmr.msra.gmra.mrb[52].mxu1 %vm1431_vm9, %v1667_v7 }
 0xb1a   :  { %2965 = vmatpush3.bf16.msra.mxu1 %v1782_v2  ;;  %2966 = vmatprep.mubr.msk.bf16.mxu1 %vm3343_vm0, %v3342_v0 }
 0xb1b   :  { %2976 = vmatprep.subr.bf16.mxu1 %v3342_v0 }
 0xb36   :  { %v1777_v3 = vpop.xlane.xlu0 %1776 }
 0xb37   :  { %3146 = vrcp.f32 %v1777_v3 }
 0xb3a   :  { %v1895_v10 = vpop.xlane.xlu0 %1894 }
 0xb3b   :  { %3148 = vrcp.f32 %v1895_v10 }
 0xb3e   :  { %v2006_v11 = vpop.xlane.xlu1 %2005  ;;  %v2119_v13 = vpop.xlane.xlu0 %2118 }
 0xb3f   :  { %3150 = vrcp.f32 %v2006_v11 }
 0xb40   :  { %3152 = vrcp.f32 %v2119_v13  ;;  %v2688_v13 = vld [vmem:[#allocation12 + $0x6] ss:$0 sm:$0xff] }
 0xb41   :  { %v3147_v8 = vpop.eup %3146 }
 0xb42   :  { %v1779_v4 = vmul.f32 %v3147_v8, %v3131_v48  ;;  %v2011_v21 = vpop.permute.xlu1 %2010 }
 0xb44   :  { %v1780_v9 = vpack.c.bf16 %v1779_v4, %v1779_v4 }
 0xb45   :  { %v3149_v14 = vpop.eup %3148 }
 0xb46   :  { %2967 = vmatmul.mubr.msk.bf16.vlgmr.msra.gmra.mrb[56].mxu1 %vm1431_vm9, %v1780_v9  ;;  %v1897_v16 = vmul.f32 %v3149_v14, %v3866_v45  ;;  %v2124_v25 = vpop.permute.xlu1 %2123 }
 0xb47   :  { %2978 = vmatprep.mubr.msk.bf16.mxu1 %vm3343_vm0, %v3342_v0 }
 0xb48   :  { %v1898_v19 = vpack.c.bf16 %v1897_v16, %v1897_v16 }
 0xb49   :  { %v3151_v20 = vpop.eup %3150 }
 0xb4a   :  { %v2008_v23 = vmul.f32 %v3151_v20, %v3868_v41  ;;  %v3153_v24 = vpop.eup %3152  ;;  %v2237_v27 = vpop.permute.xlu1 %2236 }
 0xb4b   :  { %v2121_v26 = vmul.f32 %v3153_v24, %v3872_v47 }
 0xb4c   :  { %v2009_v22 = vpack.c.bf16 %v2008_v23, %v2008_v23 }
 0xb4d   :  { %v2122_v17 = vpack.c.bf16 %v2121_v26, %v2121_v26 }
 0xb56   :  { %v2232_v15 = vpop.xlane.xlu0 %2231 }
 0xb57   :  { %3154 = vrcp.f32 %v2232_v15 }
 0xb5a   :  { %v1901_v18 = vpop.permute.xlu0 %1900 }
 0xb5b   :  { %2977 = vmatpush3.bf16.msra.mxu1 %v1901_v18 }
 0xb5c   :  { %2988 = vmatprep.subr.bf16.mxu1 %v3342_v0 }
 0xb5e   :  { %2979 = vmatmul.mubr.msk.bf16.vlgmr.msra.gmra.mrb[60].mxu1 %vm1431_vm9, %v1898_v19 }
 0xb5f   :  { %2989 = vmatpush3.bf16.msra.mxu1 %v2011_v21  ;;  %2990 = vmatprep.mubr.msk.bf16.mxu1 %vm3343_vm0, %v3342_v0 }
 0xb60   :  { %3000 = vmatprep.subr.bf16.mxu1 %v3342_v0 }
 0xb61   :  { %v3155_v28 = vpop.eup %3154 }
 0xb62   :  { %v2234_v29 = vmul.f32 %v3155_v28, %v3882_v57 }
 0xb64   :  { %v2235_v30 = vpack.c.bf16 %v2234_v29, %v2234_v29 }
 0xb66   :  { %2991 = vmatmul.mubr.msk.bf16.vlgmr.msra.gmra.mrb[64].mxu1 %vm1431_vm9, %v2009_v22 }
 0xb67   :  { %3001 = vmatpush3.bf16.msra.mxu1 %v2124_v25  ;;  %3002 = vmatprep.mubr.msk.bf16.mxu1 %vm3343_vm0, %v3342_v0 }
 0xb68   :  { %3012 = vmatprep.subr.bf16.mxu1 %v3342_v0 }
 0xb6e   :  { %3003 = vmatmul.mubr.msk.bf16.vlgmr.msra.gmra.mrb[68].mxu1 %vm1431_vm9, %v2122_v17 }
 0xb6f   :  { %3013 = vmatpush3.bf16.msra.mxu1 %v2237_v27  ;;  %3014 = vmatprep.mubr.msk.bf16.mxu1 %vm3343_vm0, %v3342_v0 }
 0xb70   :  { %3026 = vmatprep.subr.bf16.mxu1 %v3342_v0 }
 0xb76   :  { %3015 = vmatmul.mubr.msk.bf16.vlgmr.msra.gmra.mrb[72].mxu1 %vm1431_vm9, %v2235_v30 }
 0xb77   :  { %3030 = vmatprep.mubr.msk.bf16.mxu1 %vm3343_vm0, %v3342_v0 }
 0xba3   :  { %v1485_v42 = vpop.f32.mrb[44].mxu1 }
 0xba4   :  { %1491 = vst.msk [vmem:[#allocation2] sm:$0xff] %vm202_vm2, %v1485_v42  ;;  %v2932_v31 = vpop.f32.mrb[45].mxu1 }
 0xba5   :  { %v1488_v34 = vpop.f32.mrb[46].mxu1 }
 0xba6   :  { %v2933_v35 = vpop.f32.mrb[47].mxu1  ;;  %v3082_v34 = vld [vmem:[#allocation11] sm:$0xff]  }
 0xba7   :  { %3027 = vmatpush3.bf16.msra.mxu1 %v3082_v34 }
 0xba8   :  { %3028 = vmatprep.subr.bf16.mxu1 %v3342_v0 }
 0xbe4   :  { %v1595_v36 = vpop.f32.mrb[48].mxu1 }
 0xbe5   :  { %1602 = vrot.lane.b32.xlu1 %v1595_v36, %s3334_s20  ;;  %v2944_v37 = vpop.f32.mrb[49].mxu1 }
 0xbe6   :  { %v1598_v38 = vpop.f32.mrb[50].mxu1 }
 0xbe7   :  { %v2945_v39 = vpop.f32.mrb[51].mxu1 }
 0xbec   :  { %v1708_v40 = vpop.f32.mrb[52].mxu1 }
 0xbed   :  { %1715 = vrot.lane.b32.xlu0 %v1708_v40, %s3355_s10  ;;  %v2956_v48 = vpop.f32.mrb[53].mxu1 }
 0xbee   :  { %v1711_v43 = vpop.f32.mrb[54].mxu1 }
 0xbef   :  { %v2957_v45 = vpop.f32.mrb[55].mxu1 }
 0xbf0   :  { %v2692_v45 = vld [vmem:[#allocation12 + $0x7] ss:$0 sm:$0xff] }
 0xc19   :  { %v1821_v41 = vpop.f32.mrb[56].mxu1 }
 0xc1a   :  { %1828 = vrot.lane.b32.xlu0 %v1821_v41, %s3356_s3  ;;  %v2968_v49 = vpop.f32.mrb[57].mxu1 }
 0xc1b   :  { %v1824_v47 = vpop.f32.mrb[58].mxu1 }
 0xc1c   :  { %v2969_v50 = vpop.f32.mrb[59].mxu1 }
 0xc1d   :  { %v2693_v50 = vld [vmem:[#allocation12 + $0x8] ss:$0 sm:$0xff] }
 0xc31   :  { %v1940_v51 = vpop.f32.mrb[60].mxu1 }
 0xc32   :  { %1946 = vst.msk [vmem:[#allocation2 + $0x8] sm:$0xff] %vm202_vm2, %v1940_v51  ;;  %v2980_v52 = vpop.f32.mrb[61].mxu1 }
 0xc33   :  { %v1943_v53 = vpop.f32.mrb[62].mxu1 }
 0xc34   :  { %v2981_v54 = vpop.f32.mrb[63].mxu1 }
 0xc39   :  { %v2050_v55 = vpop.f32.mrb[64].mxu1 }
 0xc3a   :  { %2057 = vrot.lane.b32.xlu1 %v2050_v55, %s3334_s20  ;;  %v2992_v56 = vpop.f32.mrb[65].mxu1  ;;  %v3084_v55 = vld [vmem:[%s4004_s7] sm:$0xff]  }
 0xc3b   :  { %v2053_v57 = vpop.f32.mrb[66].mxu1  ;;  %v3085_v56 = vld [vmem:[%s4004_s7 + $0x8] sm:$0xff]  }
 0xc3c   :  { %v2993_v58 = vpop.f32.mrb[67].mxu1  ;;  %v3086_v57 = vld [vmem:[%s4004_s7 + $0x10] sm:$0xff]  }
 0xc3d   :  { %v3087_v58 = vld [vmem:[%s4004_s7 + $0x18] sm:$0xff]   ;;  %s3357_s7 = smov [#allocation14]  }
 0xc3e   :  { %s2614_s11 = sshll.u32 %s3357_s7, 4  ;;  %s2615_s11 = int_to_ptr.vmem [resolvable:$true] %s2614_s11 }
 0xc3f   :  { %p3305_p7 = scmp.lt.s32.totalorder %s2615_s11, %s2615_s11 }
 0xc41   :  { %v2163_v44 = vpop.f32.mrb[68].mxu1 }
 0xc42   :  { %2170 = vrot.lane.b32.xlu1 %v2163_v44, %s3355_s10  ;;  %v3004_v61 = vpop.f32.mrb[69].mxu1  ;;  %s3300_s10 = scalar_lea.vmem %s2615_s11, 256 }
 0xc43   :  { %v2166_v62 = vpop.f32.mrb[70].mxu1  ;;  %p3301_p6 = scmp.ne.s32.totalorder %s2615_s11, %s3300_s10  ;;  %p3306_p8 = scmp.lt.s32.totalorder %s3300_s10, %s3300_s10 }
 0xc44   :  { %v3005_v63 = vpop.f32.mrb[71].mxu1 }
 0xc45   :  { %p3307_p9 = por %p3306_p8, %p3305_p7 }
 0xc47   :  { %p3308_p10 = pnand %p3307_p9, %p3301_p6 }
 0xc49   :  { %v2276_v12 = vpop.f32.mrb[72].mxu1 }
 0xc4a   :  { %2283 = vrot.lane.b32.xlu1 %v2276_v12, %s3356_s3  ;;  %v3016_v1 = vpop.f32.mrb[73].mxu1 }
 0xc4b   :  { %v2279_v5 = vpop.f32.mrb[74].mxu1 }
 0xc4c   :  { %v3017_v6 = vpop.f32.mrb[75].mxu1 }
 0xc57   :  { %v1603_v46 = vpop.permute.xlu1 %1602 }
 0xc58   :  { %1605 = vst.msk [vmem:[#allocation2] sm:$0xff] %vm426_vm5, %v1603_v46 }
 0xc5f   :  { %v1716_v7 = vpop.permute.xlu0 %1715 }
 0xc60   :  { %1718 = vst.msk [vmem:[#allocation2] sm:$0xff] %vm542_vm6, %v1716_v7 }
 0xc8c   :  { %v1829_v2 = vpop.permute.xlu0 %1828 }
 0xc8d   :  { %1831 = vst.msk [vmem:[#allocation2] sm:$0xff] %vm658_vm7, %v1829_v2 }
 0xc94   :  { %v2287_v9 = vld [vmem:[#allocation2] sm:$0xff] }
 0xcac   :  { %v2058_v3 = vpop.permute.xlu1 %2057 }
 0xcad   :  { %2060 = vst.msk [vmem:[#allocation2 + $0x8] sm:$0xff] %vm426_vm5, %v2058_v3 }
 0xcb4   :  { %v2171_v8 = vpop.permute.xlu1 %2170 }
 0xcb5   :  { %2173 = vst.msk [vmem:[#allocation2 + $0x8] sm:$0xff] %vm542_vm6, %v2171_v8 }
 0xcbc   :  { %v2284_v4 = vpop.permute.xlu1 %2283 }
 0xcbd   :  { %2286 = vst.msk [vmem:[#allocation2 + $0x8] sm:$0xff] %vm658_vm7, %v2284_v4 }
 0xcc4   :  { %v2288_v10 = vld [vmem:[#allocation2 + $0x8] sm:$0xff] }
 0xcc5   :  { %v2294_v11 = vpack.c.bf16 %v2288_v10, %v2287_v9 }
 0xcc7   :  { %3023 = vmatmul.mubr.msk.bf16.vlgmr.msra.gmra.mrb[68].mxu0 %vm150_vm1, %v2294_v11 }
 0xcc8   :  { %3042 = vmatprep.mubr.msk.bf16.mxu0 %vm3343_vm0, %v3342_v0  ;;  %3035 = vmatpush3.bf16.msra.mxu0 %v3084_v55 }
 0xcc9   :  { %3036 = vmatprep.subr.bf16.mxu0 %v3342_v0 }
 0xccc   :  { %3037 = vmatpush3.bf16.msra.mxu0 %v3085_v56 }
 0xccd   :  { %3038 = vmatprep.subr.bf16.mxu0 %v3342_v0 }
 0xcd0   :  { %3039 = vmatpush3.bf16.msra.mxu0 %v3086_v57 }
 0xcd1   :  { %3040 = vmatprep.subr.bf16.mxu0 %v3342_v0 }
 0xcd4   :  { %3041 = vmatpush3.bf16.msra.mxu0 %v3087_v58 }
 0xd9a   :  { %v2349_v14 = vpop.f32.mrb[68].mxu0 }
 0xd9b   :  { %v2350_v15 = vadd.f32 %v2688_v13, %v2349_v14  ;;  %v3024_v16 = vpop.f32.mrb[69].mxu0 }
 0xd9c   :  { %v2352_v18 = vpop.f32.mrb[70].mxu0 }
 0xd9d   :  { %v2353_v19 = vadd.f32 %v2688_v13, %v2352_v18  ;;  %v3025_v20 = vpop.f32.mrb[71].mxu0  ;;  %v2356_v21 = vadd.f32 %v2350_v15, %v3742_v32 }
 0xd9e   :  { %v2698_v20 = vld [vmem:[#allocation12 + $0xa] ss:$0 sm:$0xff] }
 0xd9f   :  { %v2360_v23 = vsel %vm150_vm1, %v2356_v21, 0.0  ;;  %v2357_v22 = vadd.f32 %v2353_v19, %v3744_v33  ;;  %v3083_v33 = vld [vmem:[#allocation11 + $0x8] sm:$0xff]  }
 0xda0   :  { %2361 = vadd.xlane.f32.xlu0 %v2360_v23  ;;  %3029 = vmatpush3.bf16.msra.mxu1 %v3083_v33 }
 0xda1   :  { %v2363_v24 = vsel %vm150_vm1, %v2357_v22, 0.0 }
 0xda2   :  { %2364 = vadd.xlane.f32.xlu1 %v2363_v24 }
 0xe2d   :  { %v2362_v25 = vpop.xlane.xlu0 %2361 }
 0xe2e   :  { %v2366_v26 = vmul.f32 0.03125, %v2362_v25 }
 0xe2f   :  { %v2365_v17 = vpop.xlane.xlu1 %2364 }
 0xe30   :  { %v2368_v28 = vsub.f32 %v2356_v21, %v2366_v26  ;;  %v2367_v27 = vmul.f32 0.03125, %v2365_v17 }
 0xe32   :  { %v2369_v29 = vsub.f32 %v2357_v22, %v2367_v27  ;;  %v2370_v30 = vmul.f32 %v2368_v28, %v2368_v28 }
 0xe34   :  { %v2372_v42 = vsel %vm150_vm1, %v2370_v30, 0.0  ;;  %v2371_v31 = vmul.f32 %v2369_v29, %v2369_v29 }
 0xe35   :  { %2373 = vadd.xlane.f32.xlu0 %v2372_v42 }
 0xe36   :  { %v2375_v32 = vsel %vm150_vm1, %v2371_v31, 0.0 }
 0xe39   :  { %2376 = vadd.xlane.f32.xlu0 %v2375_v32 }
 0xec2   :  { %v2374_v35 = vpop.xlane.xlu0 %2373 }
 0xec3   :  { %v2378_v36 = vmul.f32 0.03125, %v2374_v35 }
 0xec5   :  { %v2380_v37 = vadd.f32 1e-12, %v2378_v36 }
 0xec6   :  { %v2377_v38 = vpop.xlane.xlu0 %2376 }
 0xec7   :  { %3156 = vrsqrt.f32 %v2380_v37  ;;  %v2379_v39 = vmul.f32 0.03125, %v2377_v38 }
 0xec9   :  { %v2381_v40 = vadd.f32 1e-12, %v2379_v39 }
 0xecb   :  { %3158 = vrsqrt.f32 %v2381_v40 }
 0xed1   :  { %v3157_v48 = vpop.eup %3156 }
 0xed2   :  { %v2384_v43 = vmul.f32 %v3157_v48, %v2368_v28 }
 0xed4   :  { %v2390_v49 = vmul.f32 %v2692_v45, %v2384_v43 }
 0xed5   :  { %v3159_v41 = vpop.eup %3158 }
 0xed6   :  { %v2385_v47 = vmul.f32 %v3159_v41, %v2369_v29  ;;  %v2396_v52 = vadd.f32 %v2693_v50, %v2390_v49 }
 0xed8   :  { %v2391_v51 = vmul.f32 %v2692_v45, %v2385_v47  ;;  %v2704_v47 = vld [vmem:[#allocation12 + $0xb] ss:$0 sm:$0xff] }
 0xeda   :  { %v2397_v53 = vadd.f32 %v2693_v50, %v2391_v51 }
 0xedc   :  { %v2402_v54 = vpack.c.bf16 %v2397_v53, %v2396_v52 }
 0xede   :  { %3031 = vmatmul.mubr.msk.bf16.vlgmr.msra.gmra.mrb[76].mxu1 %vm150_vm1, %v2402_v54 }
 0xfb1   :  { %v2457_v60 = vpop.f32.mrb[76].mxu1 }
 0xfb2   :  { %v2458_v44 = vadd.f32 %v2694_v59, %v2457_v60  ;;  %v3032_v61 = vpop.f32.mrb[77].mxu1 }
 0xfb3   :  { %v2460_v62 = vpop.f32.mrb[78].mxu1 }
 0xfb4   :  { %v2466_v63 = vmul.f32 0.044715, %v2458_v44  ;;  %v2461_v12 = vadd.f32 %v2694_v59, %v2460_v62  ;;  %v3033_v1 = vpop.f32.mrb[79].mxu1  ;;  %v2464_v13 = vmul.f32 0.5, %v2458_v44 }
 0xfb6   :  { %v2468_v5 = vmul.f32 %v2466_v63, %v2458_v44  ;;  %v2467_v6 = vmul.f32 0.044715, %v2461_v12  ;;  %v2465_v14 = vmul.f32 0.5, %v2461_v12 }
 0xfb8   :  { %v2470_v46 = vmul.f32 %v2468_v5, %v2458_v44  ;;  %v2469_v7 = vmul.f32 %v2467_v6, %v2461_v12 }
 0xfba   :  { %v2472_v2 = vadd.f32 %v2470_v46, %v2458_v44  ;;  %v2471_v3 = vmul.f32 %v2469_v7, %v2461_v12 }
 0xfbc   :  { %v2474_v8 = vmul.f32 0.7978846, %v2472_v2  ;;  %v2473_v4 = vadd.f32 %v2471_v3, %v2461_v12 }
 0xfbe   :  { %3160 = vtanh.f32 %v2474_v8  ;;  %v2475_v9 = vmul.f32 0.7978846, %v2473_v4 }
 0xfc0   :  { %3162 = vtanh.f32 %v2475_v9 }
 0xfc8   :  { %v3161_v0 = vpop.eup %3160 }
 0xfc9   :  { %v2478_v10 = vadd.f32 1.0, %v3161_v0 }
 0xfca   :  { %v3163_v11 = vpop.eup %3162 }
 0xfcb   :  { %v2479_v15 = vadd.f32 1.0, %v3163_v11  ;;  %v2480_v16 = vmul.f32 %v2478_v10, %v2464_v13 }
 0xfcd   :  { %v2481_v18 = vmul.f32 %v2479_v15, %v2465_v14 }
 0xfcf   :  { %v2490_v19 = vpack.c.bf16 %v2481_v18, %v2480_v16 }
 0xfd1   :  { %3043 = vmatmul.mubr.msk.bf16.vlgmr.msra.gmra.mrb[72].mxu0 %vm2520_vm11, %v2490_v19 }
0x10a4   :  { %v2558_v21 = vpop.f32.mrb[72].mxu0 }
0x10a5   :  { %v2559_v23 = vadd.f32 %v2698_v20, %v2558_v21  ;;  %v3044_v22 = vpop.f32.mrb[73].mxu0 }
0x10a6   :  { %v2561_v24 = vpop.f32.mrb[74].mxu0 }
0x10a7   :  { %v2562_v25 = vadd.f32 %v2698_v20, %v2561_v24  ;;  %v3045_v26 = vpop.f32.mrb[75].mxu0  ;;  %v2565_v17 = vadd.f32 %v2559_v23, %v2396_v52  ;;  %v2705_v52 = vld [vmem:[#allocation12 + $0xc] ss:$0 sm:$0xff] }
0x10a9   :  { %v2569_v28 = vsel %vm150_vm1, %v2565_v17, 0.0  ;;  %v2566_v27 = vadd.f32 %v2562_v25, %v2397_v53 }
0x10aa   :  { %2570 = vadd.xlane.f32.xlu1 %v2569_v28 }
0x10ab   :  { %v2572_v29 = vsel %vm150_vm1, %v2566_v27, 0.0 }
0x10ac   :  { %2573 = vadd.xlane.f32.xlu0 %v2572_v29 }
0x1137   :  { %v2571_v30 = vpop.xlane.xlu1 %2570 }
0x1138   :  { %v2575_v42 = vmul.f32 0.03125, %v2571_v30 }
0x1139   :  { %v2574_v31 = vpop.xlane.xlu0 %2573 }
0x113a   :  { %v2577_v32 = vsub.f32 %v2565_v17, %v2575_v42  ;;  %v2576_v34 = vmul.f32 0.03125, %v2574_v31 }
0x113c   :  { %v2578_v33 = vsub.f32 %v2566_v27, %v2576_v34  ;;  %v2579_v35 = vmul.f32 %v2577_v32, %v2577_v32 }
0x113e   :  { %v2581_v36 = vsel %vm150_vm1, %v2579_v35, 0.0  ;;  %v2580_v37 = vmul.f32 %v2578_v33, %v2578_v33 }
0x113f   :  { %2582 = vadd.xlane.f32.xlu1 %v2581_v36 }
0x1140   :  { %v2584_v38 = vsel %vm150_vm1, %v2580_v37, 0.0 }
0x1141   :  { %2585 = vadd.xlane.f32.xlu0 %v2584_v38 }
0x11cc   :  { %v2583_v39 = vpop.xlane.xlu1 %2582 }
0x11cd   :  { %v2587_v40 = vmul.f32 0.03125, %v2583_v39 }
0x11ce   :  { %v2586_v48 = vpop.xlane.xlu0 %2585 }
0x11cf   :  { %v2589_v43 = vadd.f32 1e-12, %v2587_v40  ;;  %v2588_v45 = vmul.f32 0.03125, %v2586_v48 }
0x11d1   :  { %3164 = vrsqrt.f32 %v2589_v43  ;;  %v2590_v41 = vadd.f32 1e-12, %v2588_v45 }
0x11d3   :  { %3166 = vrsqrt.f32 %v2590_v41 }
0x11db   :  { %v3165_v49 = vpop.eup %3164 }
0x11dc   :  { %v2593_v50 = vmul.f32 %v3165_v49, %v2577_v32 }
0x11dd   :  { %v3167_v51 = vpop.eup %3166 }
0x11de   :  { %v2594_v53 = vmul.f32 %v3167_v51, %v2578_v33  ;;  %v2599_v54 = vmul.f32 %v2704_v47, %v2593_v50 }
0x11e0   :  { %v2600_v55 = vmul.f32 %v2704_v47, %v2594_v53  ;;  %v2605_v56 = vadd.f32 %v2705_v52, %v2599_v54 }
0x11e2   :  { %v2606_v57 = vadd.f32 %v2705_v52, %v2600_v55  ;;  %2607 = vst.msk [vmem:[#allocation14] sm:$0xff] %vm150_vm1, %v2605_v56 }
0x11e4   :  { %2608 = vst.msk [vmem:[#allocation14 + $0x8] sm:$0xff] %vm150_vm1, %v2606_v57 }
0x11e5   :  { %3311 = shalt.err (!%p3308_p10)
}
0x11e6   :  { %s3312_s13 = scalar_lea.hbm %s4006_s9, 256 }
0x11e7   :  { %p3313_p11 = scmp.ne.s32.totalorder %s4006_s9, %s3312_s13  ;;  %p3316_p12 = scmp.lt.u32.totalorder %s3312_s13, %s4006_s9 }
0x11e9   :  { %p3318_p13 = pnand %p3316_p12, %p3313_p11 }
0x11eb   :  { %3321 = shalt.err (!%p3318_p13)
}
0x11ec   :  { %2620 = dma.vmem_to_hbm [thread:$0]  %s2615_s11, 256, %s4006_s9, [#allocation5], %s3333_s19, %s3333_s19, %s3334_s20  }
0x11ed   :  { %3330 = dma.done.wait [#allocation5], 256  }
0x11ee   :  { %3331 = vsyncadd [#allocation5], 4294967040 }
0x11ef   :  { %2624 = vsyncpa [#allocation4], 1 }
0x11f0   :  { %2625 = vsyncpa [#allocation7], 1 }
0x11f1   :  { %2626 = vsyncpa [#allocation10], 1 }
0x11f2   :  { %2627 = vsyncpa [#allocation13], 1 }
0x11f3   :  { %2628 = vsyncpa [#allocation5], 1 }

</bundles_post_ra>
